<compile_context>
chip_gen: v7x
topology: tpu7x:2x2x1
jax: 0.10.0
libtpu: 0.0.40
codegen_flags: <defaults>
</compile_context>

<pallas_src>
import math

import numpy as np
import jax
import jax.numpy as jnp
from jax.experimental import pallas as pl
from jax.experimental.pallas import tpu as pltpu

LEAKY_SLOPE = 0.2
BN_EPS = 1e-5
OUT_LANES = 128  # lane-dense output width; fake utilities live in the first nprod lanes


def _round8(n):
    return ((n + 7) // 8) * 8


# --------------------------------------------------------------------------------------
# Fused kernel
# --------------------------------------------------------------------------------------
def _make_kernel(batch, num_cus_layers, num_prod_layers, prod_out_real):
    """Refs (in order):
       x                         (B, F_pad)      raw IN, feature dim zero-padded to mult. of 8
       per cus layer l:  w_l     (K_l, N_l)      Linear weight (in,out); layer-0 folds the cus slice
                         gb_l    (2, N_l)        BN gamma / beta
       per prod layer l: w_l     (K_l, NL_l)     block-diagonal Linear weight on channel-grouped lanes
                         vec_l   (3, NL_l)       bias / gamma / beta expanded to lanes
                         grp_l   (NL_l, NL_l)    same-channel-group indicator (for MXU group sums)
       tile_m                    (Cf_pad, NL_f)  lane-tiles cus features per product channel
       gout                      (NL_f, 128)     collapses channel groups into output lanes 0..nprod-1
       out                       (B, 128)
    """
    inv_b = 1.0 / batch

    def kernel(*refs):
        x_ref = refs[0]
        out_ref = refs[-1]
        pos = 1

        x = x_ref[...]                                            # (B, F_pad) f32

        # ---------------- customer encoder ----------------
        y = x
        for _ in range(num_cus_layers):
            w = refs[pos][...]                                    # (K, N)
            gb = refs[pos + 1][...]                               # (2, N)
            pos += 2
            # Linear — bias dropped: train-mode BN over the batch cancels it exactly.
            y = jnp.dot(y, w, preferred_element_type=jnp.float32)
            # BatchNorm1d(N): two-pass batch stats (robust), biased variance, folded affine.
            mean = jnp.sum(y, axis=0, keepdims=True) * inv_b      # sublane reduce (cheap)
            d = y - mean
            var = jnp.sum(d * d, axis=0, keepdims=True) * inv_b
            y = d * (gb[0:1, :] * jax.lax.rsqrt(var + BN_EPS)) + gb[1:2, :]
            y = jnp.where(y > 0, y, LEAKY_SLOPE * y)              # LeakyReLU(0.2)
        cus = y                                                   # (B, Cf_pad)

        # ---------------- product encoder (channel-grouped lanes) ----------------
        z = x
        for l in range(num_prod_layers):
            w = refs[pos][...]                                    # (K, NL) block-diagonal
            vec = refs[pos + 1][...]                              # (3, NL): bias / gamma / beta lanes
            grp = refs[pos + 2][...]                              # (NL, NL)
            pos += 3
            inv_n = 1.0 / (batch * prod_out_real[l])              # BN1d(nprod) reduces over (B, C_out)
            z = jnp.dot(z, w, preferred_element_type=jnp.float32) + vec[0:1, :]
            # per-channel BN stats: sublane reduce (VPU) + group collapse on the MXU, no XLU loops.
            mean_l = jnp.sum(jnp.dot(z, grp, preferred_element_type=jnp.float32),
                             axis=0, keepdims=True) * inv_n
            d = z - mean_l
            var_l = jnp.sum(jnp.dot(d * d, grp, preferred_element_type=jnp.float32),
                            axis=0, keepdims=True) * inv_n
            z = d * jax.lax.rsqrt(var_l + BN_EPS) * vec[1:2, :] + vec[2:3, :]
            z = jnp.where(z > 0, z, LEAKY_SLOPE * z)

        # ---------------- fake utilities (all MXU) ----------------
        tile_m = refs[pos][...]                                   # (Cf_pad, NL_f)
        gout = refs[pos + 1][...]                                 # (NL_f, 128)
        cus_tiled = jnp.dot(cus, tile_m, preferred_element_type=jnp.float32)   # (B, NL_f)
        out_ref[...] = jnp.dot(z * cus_tiled, gout,
                               preferred_element_type=jnp.float32)             # (B, 128) lane-dense

    return kernel


# --------------------------------------------------------------------------------------
# One-time parameter packing (hoisted out of the per-forward path)
# --------------------------------------------------------------------------------------
def pack_params(cus_params, prod_params, len_customer_feature, nprod_veclen, len_prod_feature):
    """cus_params / prod_params: list of (W (out,in), b (out,), gamma, beta) per (Linear, BN) layer
    in PyTorch layouts; prod gamma/beta have length nprod_veclen (BatchNorm1d(Nprod_Veclen))."""
    assert len(cus_params) >= 1 and len(prod_params) >= 1
    assert cus_params[-1][0].shape[0] == prod_params[-1][0].shape[0], \
        "prodEncoder_channels[-1] must equal cusEncoder_channels[-1]"
    assert nprod_veclen <= OUT_LANES

    f_total = len_customer_feature + nprod_veclen * len_prod_feature
    f_pad = _round8(f_total)
    ops = []

    # customer encoder: (in, out) weights; layer-0 folds the cusFs slice of IN (rows >= len_cus are 0)
    k_prev, c_in_real, in_off = f_pad, len_customer_feature, 0
    for (w, b, g, bt) in cus_params:
        w = np.asarray(w, np.float32)
        c_out, c_in = w.shape
        assert c_in == c_in_real
        n_pad = _round8(c_out)
        wk = np.zeros((k_prev, n_pad), np.float32)
        wk[in_off:in_off + c_in, :c_out] = w.T
        gb = np.zeros((2, n_pad), np.float32)
        gb[0, :c_out] = np.asarray(g, np.float32)
        gb[1, :c_out] = np.asarray(bt, np.float32)
        ops += [wk, gb]
        k_prev, c_in_real, in_off = n_pad, c_out, 0
    cus_final_pad = k_prev

    # product encoder: block-diagonal weights on channel-grouped lanes; layer-0 folds the prodFs slice
    k_prev = f_pad
    in_base, in_stride, c_in_real = len_customer_feature, len_prod_feature, len_prod_feature
    prod_out_real = []
    c_pad = None
    for (w, b, g, bt) in prod_params:
        w = np.asarray(w, np.float32)
        c_out, c_in = w.shape
        assert c_in == c_in_real
        c_pad = _round8(c_out)
        nl = nprod_veclen * c_pad
        wk = np.zeros((k_prev, nl), np.float32)
        vec = np.zeros((3, nl), np.float32)
        bv = np.asarray(b, np.float32)
        gv = np.asarray(g, np.float32)
        btv = np.asarray(bt, np.float32)
        for c in range(nprod_veclen):
            r0, o0 = in_base + c * in_stride, c * c_pad
            wk[r0:r0 + c_in, o0:o0 + c_out] = w.T
            vec[0, o0:o0 + c_out] = bv            # bias (kept: not cancelled by BatchNorm1d(nprod))
            vec[1, o0:o0 + c_out] = gv[c]         # gamma expanded to lanes (pads stay 0)
            vec[2, o0:o0 + c_out] = btv[c]        # beta  expanded to lanes (pads stay 0)
        gid = np.arange(nl) // c_pad
        grp = (gid[:, None] == gid[None, :]).astype(np.float32)   # same-group indicator
        ops += [wk, vec, grp]
        prod_out_real.append(c_out)
        k_prev, in_base, in_stride, c_in_real = nl, 0, c_pad, c_out
    nl_last = k_prev
    cf_real = prod_out_real[-1]

    # fake-utils helper matrices
    tile_m = np.zeros((cus_final_pad, nl_last), np.float32)
    gout = np.zeros((nl_last, OUT_LANES), np.float32)
    for c in range(nprod_veclen):
        for k in range(cf_real):
            tile_m[k, c * c_pad + k] = 1.0
        gout[c * c_pad:(c + 1) * c_pad, c] = 1.0
    ops += [tile_m, gout]

    packed = tuple(jnp.asarray(a) for a in ops)
    meta = dict(f_total=f_total, f_pad=f_pad,
                num_cus_layers=len(cus_params), num_prod_layers=len(prod_params),
                prod_out_real=tuple(prod_out_real))
    return packed, meta


# --------------------------------------------------------------------------------------
# Forward wrapper
# --------------------------------------------------------------------------------------
def feature_encoder(IN, packed, meta, nprod_veclen):
    """Fused FeatureEncoder.forward (CROSS=False, cus/prod_normalize=False), train-mode BatchNorm."""
    # TODO(synk): CROSS=True and cus_normalize/prod_normalize=True branches are not implemented
    # (module defaults are False); only the default forward path is fused here.
    batch, f_in = IN.shape
    assert f_in == meta["f_total"]
    assert batch % 8 == 0, "batch must be a multiple of 8 (sublane tiling)"

    x = jnp.asarray(IN, jnp.float32)
    if meta["f_pad"] > meta["f_total"]:
        x = jnp.pad(x, ((0, 0), (0, meta["f_pad"] - meta["f_total"])))   # the only wrapper activation op

    kernel = _make_kernel(batch, meta["num_cus_layers"], meta["num_prod_layers"],
                          meta["prod_out_real"])
    out = pl.pallas_call(
        kernel,
        out_shape=jax.ShapeDtypeStruct((batch, OUT_LANES), jnp.float32),
        in_specs=[pl.BlockSpec(memory_space=pltpu.MemorySpace.VMEM)] * (1 + len(packed)),
        out_specs=pl.BlockSpec(memory_space=pltpu.MemorySpace.VMEM),
    )(x, *packed)
    return out[:, :nprod_veclen]


# --------------------------------------------------------------------------------------
# PyTorch-default init + pure-JAX reference
# --------------------------------------------------------------------------------------
def init_params(key, cus_channels, prod_channels, nprod_veclen):
    """PyTorch-default init: Linear ~ U(-1/sqrt(fan_in), +), BatchNorm gamma=1, beta=0."""
    def linear(k, c_in, c_out):
        kw, kb = jax.random.split(k)
        bound = 1.0 / math.sqrt(c_in)
        w = jax.random.uniform(kw, (c_out, c_in), jnp.float32, -bound, bound)
        b = jax.random.uniform(kb, (c_out,), jnp.float32, -bound, bound)
        return w, b

    cus_params = []
    for c_in, c_out in zip(cus_channels[:-1], cus_channels[1:]):
        key, k = jax.random.split(key)
        w, b = linear(k, c_in, c_out)
        cus_params.append((w, b, jnp.ones((c_out,), jnp.float32),
                           jnp.zeros((c_out,), jnp.float32)))
    prod_params = []
    for c_in, c_out in zip(prod_channels[:-1], prod_channels[1:]):
        key, k = jax.random.split(key)
        w, b = linear(k, c_in, c_out)
        prod_params.append((w, b, jnp.ones((nprod_veclen,), jnp.float32),
                            jnp.zeros((nprod_veclen,), jnp.float32)))
    return cus_params, prod_params


def reference(IN, cus_params, prod_params, len_customer_feature, nprod_veclen, len_prod_feature):
    """Pure-JAX emulation of FeatureEncoder.forward (train-mode BN, CROSS=False)."""
    batch = IN.shape[0]
    cus = IN[:, :len_customer_feature].astype(jnp.float32)
    prod = IN[:, len_customer_feature:].astype(jnp.float32).reshape(
        batch, nprod_veclen, len_prod_feature)
    for (w, b, gamma, beta) in cus_params:
        cus = cus @ w.T + b
        mean = jnp.mean(cus, axis=0, keepdims=True)
        var = jnp.mean((cus - mean) ** 2, axis=0, keepdims=True)
        cus = (cus - mean) / jnp.sqrt(var + BN_EPS) * gamma + beta
        cus = jnp.where(cus > 0, cus, LEAKY_SLOPE * cus)
    for (w, b, gamma, beta) in prod_params:
        prod = jnp.einsum("bkc,oc->bko", prod, w) + b
        mean = jnp.mean(prod, axis=(0, 2), keepdims=True)
        var = jnp.mean((prod - mean) ** 2, axis=(0, 2), keepdims=True)
        prod = ((prod - mean) / jnp.sqrt(var + BN_EPS)
                * gamma.reshape(1, nprod_veclen, 1) + beta.reshape(1, nprod_veclen, 1))
        prod = jnp.where(prod > 0, prod, LEAKY_SLOPE * prod)
    return jnp.einsum("bko,bo->bk", prod, cus)


if __name__ == "__main__":
    # FeatureEncoder(Len_customerFeature=16, cusEncoder_midLayers=[32, 8],
    #                Nprod_Veclen=5, Len_prodFeature=3, prodEncoder_midLayers=[8], CROSS=False)
    len_customer_feature = 16
    nprod_veclen = 5
    len_prod_feature = 3
    cus_channels = [16, 32, 8]
    prod_channels = [3, 8]         # last channels must match: 8 == 8
    batch = 128                    # fills sublanes / MXU rows

    key = jax.random.PRNGKey(0)
    key, kx = jax.random.split(key)
    IN = jax.random.normal(
        kx, (batch, len_customer_feature + nprod_veclen * len_prod_feature), jnp.float32)
    cus_params, prod_params = init_params(key, cus_channels, prod_channels, nprod_veclen)

    # One-time parameter packing (hoisted out of the per-forward path).
    packed, meta = pack_params(cus_params, prod_params,
                               len_customer_feature, nprod_veclen, len_prod_feature)

    out = feature_encoder(IN, packed, meta, nprod_veclen)
    out = jax.block_until_ready(out)

    ref = reference(IN, cus_params, prod_params,
                    len_customer_feature, nprod_veclen, len_prod_feature)
    assert out.shape == (batch, nprod_veclen)
    assert jnp.allclose(out, ref, atol=1e-3, rtol=1e-3), "Pallas output mismatch vs reference"

    print("KERNEL_OK")
</pallas_src>

<mosaic_0001>
module attributes {stable_mosaic.version = 11 : i64} {
  func.func @kernel(%arg0: memref<128x32xf32, #tpu.memory_space<vmem>>, %arg1: memref<32x32xf32, #tpu.memory_space<vmem>>, %arg2: memref<2x32xf32, #tpu.memory_space<vmem>>, %arg3: memref<32x8xf32, #tpu.memory_space<vmem>>, %arg4: memref<2x8xf32, #tpu.memory_space<vmem>>, %arg5: memref<32x40xf32, #tpu.memory_space<vmem>>, %arg6: memref<3x40xf32, #tpu.memory_space<vmem>>, %arg7: memref<40x40xf32, #tpu.memory_space<vmem>>, %arg8: memref<8x40xf32, #tpu.memory_space<vmem>>, %arg9: memref<40x128xf32, #tpu.memory_space<vmem>>, %arg10: memref<128x128xf32, #tpu.memory_space<vmem>>) attributes {dimension_semantics = [], scalar_prefetch = 0 : i64, scratch_operands = 0 : i64, tpu.core_type = #tpu.core_type<tc>} {
    %c0 = arith.constant 0 : index
    %c0_0 = arith.constant 0 : index
    %0 = vector.load %arg0[%c0, %c0_0] : memref<128x32xf32, #tpu.memory_space<vmem>>, vector<128x32xf32>
    %c0_1 = arith.constant 0 : index
    %c0_2 = arith.constant 0 : index
    %1 = vector.load %arg1[%c0_1, %c0_2] : memref<32x32xf32, #tpu.memory_space<vmem>>, vector<32x32xf32>
    %c0_3 = arith.constant 0 : index
    %c0_4 = arith.constant 0 : index
    %2 = vector.load %arg2[%c0_3, %c0_4] : memref<2x32xf32, #tpu.memory_space<vmem>>, vector<2x32xf32>
    %cst = arith.constant dense<0.000000e+00> : vector<128x32xf32>
    %3 = tpu.matmul %0, %1, %cst {dimension_numbers = #tpu.dot_dimension_numbers<[1], [0], [0], [1], [0, 0, 1, 1], [], []>} : vector<128x32xf32>, vector<32x32xf32>, vector<128x32xf32> -> vector<128x32xf32>
    %cst_5 = arith.constant dense<0.000000e+00> : vector<32xf32>
    %4 = vector.multi_reduction <add>, %3, %cst_5 [0] : vector<128x32xf32> to vector<32xf32>
    %5 = vector.shape_cast %4 : vector<32xf32> to vector<1x32xf32>
    %cst_6 = arith.constant 7.812500e-03 : f32
    %6 = vector.broadcast %cst_6 : f32 to vector<1x32xf32>
    %7 = arith.mulf %5, %6 : vector<1x32xf32>
    %8 = vector.broadcast %7 : vector<1x32xf32> to vector<128x32xf32>
    %9 = arith.subf %3, %8 : vector<128x32xf32>
    %10 = arith.mulf %9, %9 : vector<128x32xf32>
    %cst_7 = arith.constant dense<0.000000e+00> : vector<32xf32>
    %11 = vector.multi_reduction <add>, %10, %cst_7 [0] : vector<128x32xf32> to vector<32xf32>
    %12 = vector.shape_cast %11 : vector<32xf32> to vector<1x32xf32>
    %cst_8 = arith.constant 7.812500e-03 : f32
    %13 = vector.broadcast %cst_8 : f32 to vector<1x32xf32>
    %14 = arith.mulf %12, %13 : vector<1x32xf32>
    %15 = vector.extract_strided_slice %2 {offsets = [0, 0], sizes = [1, 32], strides = [1, 1]} : vector<2x32xf32> to vector<1x32xf32>
    %cst_9 = arith.constant 9.99999974E-6 : f32
    %16 = vector.broadcast %cst_9 : f32 to vector<1x32xf32>
    %17 = arith.addf %14, %16 : vector<1x32xf32>
    %18 = math.rsqrt %17 : vector<1x32xf32>
    %19 = arith.mulf %15, %18 : vector<1x32xf32>
    %20 = vector.broadcast %19 : vector<1x32xf32> to vector<128x32xf32>
    %21 = arith.mulf %9, %20 : vector<128x32xf32>
    %22 = vector.extract_strided_slice %2 {offsets = [1, 0], sizes = [1, 32], strides = [1, 1]} : vector<2x32xf32> to vector<1x32xf32>
    %23 = vector.broadcast %22 : vector<1x32xf32> to vector<128x32xf32>
    %24 = arith.addf %21, %23 : vector<128x32xf32>
    %cst_10 = arith.constant 0.000000e+00 : f32
    %25 = vector.broadcast %cst_10 : f32 to vector<128x32xf32>
    %26 = arith.cmpf ogt, %24, %25 : vector<128x32xf32>
    %cst_11 = arith.constant 2.000000e-01 : f32
    %27 = vector.broadcast %cst_11 : f32 to vector<128x32xf32>
    %28 = arith.mulf %27, %24 : vector<128x32xf32>
    %29 = arith.select %26, %24, %28 : vector<128x32xi1>, vector<128x32xf32>
    %c0_12 = arith.constant 0 : index
    %c0_13 = arith.constant 0 : index
    %30 = vector.load %arg3[%c0_12, %c0_13] : memref<32x8xf32, #tpu.memory_space<vmem>>, vector<32x8xf32>
    %c0_14 = arith.constant 0 : index
    %c0_15 = arith.constant 0 : index
    %31 = vector.load %arg4[%c0_14, %c0_15] : memref<2x8xf32, #tpu.memory_space<vmem>>, vector<2x8xf32>
    %cst_16 = arith.constant dense<0.000000e+00> : vector<128x8xf32>
    %32 = tpu.matmul %29, %30, %cst_16 {dimension_numbers = #tpu.dot_dimension_numbers<[1], [0], [0], [1], [0, 0, 1, 1], [], []>} : vector<128x32xf32>, vector<32x8xf32>, vector<128x8xf32> -> vector<128x8xf32>
    %cst_17 = arith.constant dense<0.000000e+00> : vector<8xf32>
    %33 = vector.multi_reduction <add>, %32, %cst_17 [0] : vector<128x8xf32> to vector<8xf32>
    %34 = vector.shape_cast %33 : vector<8xf32> to vector<1x8xf32>
    %cst_18 = arith.constant 7.812500e-03 : f32
    %35 = vector.broadcast %cst_18 : f32 to vector<1x8xf32>
    %36 = arith.mulf %34, %35 : vector<1x8xf32>
    %37 = vector.broadcast %36 : vector<1x8xf32> to vector<128x8xf32>
    %38 = arith.subf %32, %37 : vector<128x8xf32>
    %39 = arith.mulf %38, %38 : vector<128x8xf32>
    %cst_19 = arith.constant dense<0.000000e+00> : vector<8xf32>
    %40 = vector.multi_reduction <add>, %39, %cst_19 [0] : vector<128x8xf32> to vector<8xf32>
    %41 = vector.shape_cast %40 : vector<8xf32> to vector<1x8xf32>
    %cst_20 = arith.constant 7.812500e-03 : f32
    %42 = vector.broadcast %cst_20 : f32 to vector<1x8xf32>
    %43 = arith.mulf %41, %42 : vector<1x8xf32>
    %44 = vector.extract_strided_slice %31 {offsets = [0, 0], sizes = [1, 8], strides = [1, 1]} : vector<2x8xf32> to vector<1x8xf32>
    %cst_21 = arith.constant 9.99999974E-6 : f32
    %45 = vector.broadcast %cst_21 : f32 to vector<1x8xf32>
    %46 = arith.addf %43, %45 : vector<1x8xf32>
    %47 = math.rsqrt %46 : vector<1x8xf32>
    %48 = arith.mulf %44, %47 : vector<1x8xf32>
    %49 = vector.broadcast %48 : vector<1x8xf32> to vector<128x8xf32>
    %50 = arith.mulf %38, %49 : vector<128x8xf32>
    %51 = vector.extract_strided_slice %31 {offsets = [1, 0], sizes = [1, 8], strides = [1, 1]} : vector<2x8xf32> to vector<1x8xf32>
    %52 = vector.broadcast %51 : vector<1x8xf32> to vector<128x8xf32>
    %53 = arith.addf %50, %52 : vector<128x8xf32>
    %cst_22 = arith.constant 0.000000e+00 : f32
    %54 = vector.broadcast %cst_22 : f32 to vector<128x8xf32>
    %55 = arith.cmpf ogt, %53, %54 : vector<128x8xf32>
    %cst_23 = arith.constant 2.000000e-01 : f32
    %56 = vector.broadcast %cst_23 : f32 to vector<128x8xf32>
    %57 = arith.mulf %56, %53 : vector<128x8xf32>
    %58 = arith.select %55, %53, %57 : vector<128x8xi1>, vector<128x8xf32>
    %c0_24 = arith.constant 0 : index
    %c0_25 = arith.constant 0 : index
    %59 = vector.load %arg5[%c0_24, %c0_25] : memref<32x40xf32, #tpu.memory_space<vmem>>, vector<32x40xf32>
    %c0_26 = arith.constant 0 : index
    %c0_27 = arith.constant 0 : index
    %60 = vector.load %arg6[%c0_26, %c0_27] : memref<3x40xf32, #tpu.memory_space<vmem>>, vector<3x40xf32>
    %c0_28 = arith.constant 0 : index
    %c0_29 = arith.constant 0 : index
    %61 = vector.load %arg7[%c0_28, %c0_29] : memref<40x40xf32, #tpu.memory_space<vmem>>, vector<40x40xf32>
    %cst_30 = arith.constant dense<0.000000e+00> : vector<128x40xf32>
    %62 = tpu.matmul %0, %59, %cst_30 {dimension_numbers = #tpu.dot_dimension_numbers<[1], [0], [0], [1], [0, 0, 1, 1], [], []>} : vector<128x32xf32>, vector<32x40xf32>, vector<128x40xf32> -> vector<128x40xf32>
    %63 = vector.extract_strided_slice %60 {offsets = [0, 0], sizes = [1, 40], strides = [1, 1]} : vector<3x40xf32> to vector<1x40xf32>
    %64 = vector.broadcast %63 : vector<1x40xf32> to vector<128x40xf32>
    %65 = arith.addf %62, %64 : vector<128x40xf32>
    %cst_31 = arith.constant dense<0.000000e+00> : vector<128x40xf32>
    %66 = tpu.matmul %65, %61, %cst_31 {dimension_numbers = #tpu.dot_dimension_numbers<[1], [0], [0], [1], [0, 0, 1, 1], [], []>} : vector<128x40xf32>, vector<40x40xf32>, vector<128x40xf32> -> vector<128x40xf32>
    %cst_32 = arith.constant dense<0.000000e+00> : vector<40xf32>
    %67 = vector.multi_reduction <add>, %66, %cst_32 [0] : vector<128x40xf32> to vector<40xf32>
    %68 = vector.shape_cast %67 : vector<40xf32> to vector<1x40xf32>
    %cst_33 = arith.constant 9.765625E-4 : f32
    %69 = vector.broadcast %cst_33 : f32 to vector<1x40xf32>
    %70 = arith.mulf %68, %69 : vector<1x40xf32>
    %71 = vector.broadcast %70 : vector<1x40xf32> to vector<128x40xf32>
    %72 = arith.subf %65, %71 : vector<128x40xf32>
    %73 = arith.mulf %72, %72 : vector<128x40xf32>
    %cst_34 = arith.constant dense<0.000000e+00> : vector<128x40xf32>
    %74 = tpu.matmul %73, %61, %cst_34 {dimension_numbers = #tpu.dot_dimension_numbers<[1], [0], [0], [1], [0, 0, 1, 1], [], []>} : vector<128x40xf32>, vector<40x40xf32>, vector<128x40xf32> -> vector<128x40xf32>
    %cst_35 = arith.constant dense<0.000000e+00> : vector<40xf32>
    %75 = vector.multi_reduction <add>, %74, %cst_35 [0] : vector<128x40xf32> to vector<40xf32>
    %76 = vector.shape_cast %75 : vector<40xf32> to vector<1x40xf32>
    %cst_36 = arith.constant 9.765625E-4 : f32
    %77 = vector.broadcast %cst_36 : f32 to vector<1x40xf32>
    %78 = arith.mulf %76, %77 : vector<1x40xf32>
    %cst_37 = arith.constant 9.99999974E-6 : f32
    %79 = vector.broadcast %cst_37 : f32 to vector<1x40xf32>
    %80 = arith.addf %78, %79 : vector<1x40xf32>
    %81 = math.rsqrt %80 : vector<1x40xf32>
    %82 = vector.broadcast %81 : vector<1x40xf32> to vector<128x40xf32>
    %83 = arith.mulf %72, %82 : vector<128x40xf32>
    %84 = vector.extract_strided_slice %60 {offsets = [1, 0], sizes = [1, 40], strides = [1, 1]} : vector<3x40xf32> to vector<1x40xf32>
    %85 = vector.broadcast %84 : vector<1x40xf32> to vector<128x40xf32>
    %86 = arith.mulf %83, %85 : vector<128x40xf32>
    %87 = vector.extract_strided_slice %60 {offsets = [2, 0], sizes = [1, 40], strides = [1, 1]} : vector<3x40xf32> to vector<1x40xf32>
    %88 = vector.broadcast %87 : vector<1x40xf32> to vector<128x40xf32>
    %89 = arith.addf %86, %88 : vector<128x40xf32>
    %cst_38 = arith.constant 0.000000e+00 : f32
    %90 = vector.broadcast %cst_38 : f32 to vector<128x40xf32>
    %91 = arith.cmpf ogt, %89, %90 : vector<128x40xf32>
    %cst_39 = arith.constant 2.000000e-01 : f32
    %92 = vector.broadcast %cst_39 : f32 to vector<128x40xf32>
    %93 = arith.mulf %92, %89 : vector<128x40xf32>
    %94 = arith.select %91, %89, %93 : vector<128x40xi1>, vector<128x40xf32>
    %c0_40 = arith.constant 0 : index
    %c0_41 = arith.constant 0 : index
    %95 = vector.load %arg8[%c0_40, %c0_41] : memref<8x40xf32, #tpu.memory_space<vmem>>, vector<8x40xf32>
    %c0_42 = arith.constant 0 : index
    %c0_43 = arith.constant 0 : index
    %96 = vector.load %arg9[%c0_42, %c0_43] : memref<40x128xf32, #tpu.memory_space<vmem>>, vector<40x128xf32>
    %cst_44 = arith.constant dense<0.000000e+00> : vector<128x40xf32>
    %97 = tpu.matmul %58, %95, %cst_44 {dimension_numbers = #tpu.dot_dimension_numbers<[1], [0], [0], [1], [0, 0, 1, 1], [], []>} : vector<128x8xf32>, vector<8x40xf32>, vector<128x40xf32> -> vector<128x40xf32>
    %98 = arith.mulf %94, %97 : vector<128x40xf32>
    %cst_45 = arith.constant dense<0.000000e+00> : vector<128x128xf32>
    %99 = tpu.matmul %98, %96, %cst_45 {dimension_numbers = #tpu.dot_dimension_numbers<[1], [0], [0], [1], [0, 0, 1, 1], [], []>} : vector<128x40xf32>, vector<40x128xf32>, vector<128x128xf32> -> vector<128x128xf32>
    %c0_46 = arith.constant 0 : index
    %c0_47 = arith.constant 0 : index
    %100 = vector.load %arg10[%c0_46, %c0_47] : memref<128x128xf32, #tpu.memory_space<vmem>>, vector<128x128xf32>
    tpu.vector_store %arg10[%c0_46, %c0_47], %99 {strides = array<i32>} : memref<128x128xf32, #tpu.memory_space<vmem>>, vector<128x128xf32>,
    return
  }
}

</mosaic_0001>

<bundles_post_ra>
// kernel: tpu_custom_call.1
= control target key start
LH: loop header
LB: loop body
LE: loop exit
PB: predicated region body
PF: predicated region fallthrough
CT: control target
= control target key end

     0   :  { %vm57_vm0 = vcmask 261120   ;;  %s3670_s0 = inlined_call_operand.vmem [shape: f32[128,32], index: 0, kind: input, shape index: {}]   ;;  %s3671_s1 = inlined_call_operand.vmem [shape: f32[32,32], index: 1, kind: input, shape index: {}]   ;;  %s3672_s2 = inlined_call_operand.vmem [shape: f32[2,32], index: 2, kind: input, shape index: {}]   ;;  %s3673_s3 = inlined_call_operand.vmem [shape: f32[32,8], index: 3, kind: input, shape index: {}]   ;;  %s3674_s4 = inlined_call_operand.vmem [shape: f32[2,8], index: 4, kind: input, shape index: {}]   ;;  %s3675_s5 = inlined_call_operand.vmem [shape: f32[32,40], index: 5, kind: input, shape index: {}]   ;;  %s3676_s6 = inlined_call_operand.vmem [shape: f32[3,40], index: 6, kind: input, shape index: {}]   ;;  %s3677_s7 = inlined_call_operand.vmem [shape: f32[40,40], index: 7, kind: input, shape index: {}]   ;;  %s3678_s8 = inlined_call_operand.vmem [shape: f32[8,40], index: 8, kind: input, shape index: {}]   ;;  %s3679_s9 = inlined_call_operand.vmem [shape: f32[40,128], index: 9, kind: input, shape index: {}]   ;;  %s3680_s10 = inlined_call_operand.hbm [shape: f32[128,128], index: 10, kind: output, shape index: {}]  }
   0x1   :  { %v52_v0 = vld [vmem:[%s3671_s1] sm:$0xff]  ;;  %v53_v1 = vld [vmem:[%s3671_s1 + $0x8] sm:$0xff]  ;;  %v54_v2 = vld [vmem:[%s3671_s1 + $0x10] sm:$0xff] }
   0x2   :  { %v2524_v3 = vpack.c.bf16 %v53_v1, %v52_v0  ;;  %v55_v4 = vld [vmem:[%s3671_s1 + $0x18] sm:$0xff]  ;;  %v36_v5 = vld [vmem:[%s3670_s0] sm:$0xff]  ;;  %v849_v9 = vld [vmem:[%s3675_s5 + $0x8] sm:$0xff] }
   0x3   :  { %v2528_v6 = vpack.c.bf16 %v55_v4, %v54_v2  ;;  %2308 = vmatprep.mubr.msk.f32.mxu0 %vm57_vm0, %v36_v5  ;;  %v44_v7 = vld [vmem:[%s3670_s0 + $0x40] sm:$0xff]  ;;  %v850_v10 = vld [vmem:[%s3675_s5 + $0x10] sm:$0xff]  ;;  %v851_v11 = vld [vmem:[%s3675_s5 + $0x18] sm:$0xff] }
   0x4   :  { %2525 = vmatprep.subr.bf16.mxu0 %v2524_v3  ;;  %2572 = vmatprep.subr.bf16.mxu1 %v2524_v3  ;;  %v848_v8 = vld [vmem:[%s3675_s5] sm:$0xff]  ;;  %v37_v12 = vld [vmem:[%s3670_s0 + $0x8] sm:$0xff] }
   0x5   :  { %2527 = vmatpush3.bf16.msra.mxu0 %v2524_v3  ;;  %2574 = vmatpush3.bf16.msra.mxu1 %v2524_v3  ;;  %v45_v13 = vld [vmem:[%s3670_s0 + $0x48] sm:$0xff]  ;;  %v2540_v14 = vpack.c.bf16 %v849_v9, %v848_v8 }
   0x6   :  { %2529 = vmatprep.subr.bf16.mxu0 %v2528_v6  ;;  %2573 = vmatprep.subr.bf16.mxu1 %v2528_v6 }
   0x7   :  { %2320 = vmatprep.mubr.msk.f32.mxu1 %vm57_vm0, %v44_v7 }
   0x9   :  { %2531 = vmatpush3.bf16.msra.mxu0 %v2528_v6  ;;  %2575 = vmatpush3.bf16.msra.mxu1 %v2528_v6 }
   0xa   :  { %15 = vsyncpa [#allocation3], 0  ;;  %v38_v15 = vld [vmem:[%s3670_s0 + $0x10] sm:$0xff]  ;;  %2541 = vmatprep.subr.bf16.mxu0 %v2540_v14  ;;  %v2544_v17 = vpack.c.bf16 %v851_v11, %v850_v10  ;;  %v39_v18 = vld [vmem:[%s3670_s0 + $0x18] sm:$0xff]  ;;  %v362_v28 = vlaneseq }
   0xb   :  { %v46_v16 = vld [vmem:[%s3670_s0 + $0x50] sm:$0xff]  ;;  %v47_v19 = vld [vmem:[%s3670_s0 + $0x58] sm:$0xff]  ;;  %v40_v20 = vld [vmem:[%s3670_s0 + $0x20] sm:$0xff] }
   0xc   :  { %2309 = vmatmul.mubr.msk.f32.vlgmr.msra.gmra.mrb[0].mxu0 %vm57_vm0, %v37_v12  ;;  %2321 = vmatmul.mubr.msk.f32.vlgmr.msra.gmra.mrb[0].mxu1 %vm57_vm0, %v45_v13  ;;  %v48_v21 = vld [vmem:[%s3670_s0 + $0x60] sm:$0xff]  ;;  %v41_v22 = vld [vmem:[%s3670_s0 + $0x28] sm:$0xff]  ;;  %v42_v24 = vld [vmem:[%s3670_s0 + $0x30] sm:$0xff]  ;;  %v2772_v29 = vshrl.u32 %v362_v28, 7 }
   0xd   :  { %2311 = vmatprep.mubr.msk.f32.mxu0 %vm57_vm0, %v38_v15  ;;  %2323 = vmatprep.mubr.msk.f32.mxu1 %vm57_vm0, %v46_v16  ;;  %v49_v23 = vld [vmem:[%s3670_s0 + $0x68] sm:$0xff]  ;;  %v50_v25 = vld [vmem:[%s3670_s0 + $0x70] sm:$0xff]  ;;  %v43_v26 = vld [vmem:[%s3670_s0 + $0x38] sm:$0xff] }
   0xe   :  { %2543 = vmatpush3.bf16.msra.mxu0 %v2540_v14  ;;  %v51_v27 = vld [vmem:[%s3670_s0 + $0x78] sm:$0xff]  ;;  %v450_v30 = vld [vmem:[%s3673_s3] sm:$0xff]  ;;  %v451_v31 = vld [vmem:[%s3673_s3 + $0x8] sm:$0xff]  ;;  %v1542_v32 = vsub.s32 2, %v2772_v29 }
   0xf   :  { %2545 = vmatprep.subr.bf16.mxu0 %v2544_v17  ;;  %v2532_v33 = vpack.c.bf16 %v451_v31, %v450_v30  ;;  %v452_v34 = vld [vmem:[%s3673_s3 + $0x10] sm:$0xff]  ;;  %v453_v35 = vld [vmem:[%s3673_s3 + $0x18] sm:$0xff]  ;;  %v2790_v36 = vld [vmem:[%s3676_s6] sm:$0x7] }
  0x10   :  { %2312 = vmatmul.mubr.msk.f32.gmra.mrb[2].mxu0 %vm57_vm0, %v39_v18  ;;  %2324 = vmatmul.mubr.msk.f32.gmra.mrb[2].mxu1 %vm57_vm0, %v47_v19  ;;  %v2536_v37 = vpack.c.bf16 %v453_v35, %v452_v34  ;;  %v2793_v38 = vrot.slane %v2790_v36, %v1542_v32  ;;  %v853_v39 = vld [vmem:[%s3677_s7] sm:$0xff]  ;;  %v854_v40 = vld [vmem:[%s3677_s7 + $0x8] sm:$0xff]  ;;  %v855_v58 = vld [vmem:[%s3677_s7 + $0x10] sm:$0xff] }
  0x11   :  { %2314 = vmatprep.mubr.msk.f32.mxu0 %vm57_vm0, %v40_v20  ;;  %2326 = vmatprep.mubr.msk.f32.mxu1 %vm57_vm0, %v48_v21  ;;  %v2801_v41 = vpack.c.bf16 %v854_v40, %v853_v39  ;;  %v856_v59 = vld [vmem:[%s3677_s7 + $0x18] sm:$0xff] }
  0x12   :  { %2547 = vmatpush3.bf16.msra.mxu0 %v2544_v17  ;;  %2533 = vmatprep.subr.bf16.mxu1 %v2532_v33  ;;  %v2842_v63 = vpack.c.bf16 %v856_v59, %v855_v58 }
  0x13   :  { %2535 = vmatpush3.bf16.msra.mxu1 %v2532_v33  ;;  %2557 = vmatprep.subr.bf16.mxu0 %v2801_v41 }
  0x14   :  { %2315 = vmatmul.mubr.msk.f32.gmra.mrb[4].mxu0 %vm57_vm0, %v41_v22  ;;  %2327 = vmatmul.mubr.msk.f32.gmra.mrb[4].mxu1 %vm57_vm0, %v49_v23 }
  0x15   :  { %2317 = vmatprep.mubr.msk.f32.mxu0 %vm57_vm0, %v42_v24  ;;  %2329 = vmatprep.mubr.msk.f32.mxu1 %vm57_vm0, %v50_v25 }
  0x16   :  { %2537 = vmatprep.subr.bf16.mxu1 %v2536_v37 }
  0x17   :  { %2539 = vmatpush3.bf16.msra.mxu1 %v2536_v37 }
  0x18   :  { %2318 = vmatmul.mubr.msk.f32.gmra.mrb[6].mxu0 %vm57_vm0, %v43_v26  ;;  %2330 = vmatmul.mubr.msk.f32.gmra.mrb[6].mxu1 %vm57_vm0, %v51_v27 }
  0x19   :  { %2372 = vmatprep.mubr.msk.f32.mxu0 %vm57_vm0, %v36_v5  ;;  %2549 = vmatprep.subr.bf16.mxu1 %v2801_v41 }
  0x1c   :  { %2373 = vmatmul.mubr.msk.f32.vlgmr.msra.gmra.mrb[8].mxu0 %vm57_vm0, %v37_v12 }
  0x1d   :  { %2375 = vmatprep.mubr.msk.f32.mxu0 %vm57_vm0, %v38_v15  ;;  %2559 = vmatpush3.bf16.msra.mxu0 %v2801_v41 }
  0x1e   :  { %2561 = vmatprep.subr.bf16.mxu0 %v2842_v63 }
  0x20   :  { %2376 = vmatmul.mubr.msk.f32.gmra.mrb[10].mxu0 %vm57_vm0, %v39_v18 }
  0x21   :  { %2378 = vmatprep.mubr.msk.f32.mxu0 %vm57_vm0, %v40_v20  ;;  %2563 = vmatpush3.bf16.msra.mxu0 %v2842_v63 }
  0x24   :  { %2379 = vmatmul.mubr.msk.f32.gmra.mrb[12].mxu0 %vm57_vm0, %v41_v22 }
  0x25   :  { %2381 = vmatprep.mubr.msk.f32.mxu0 %vm57_vm0, %v42_v24 }
  0x28   :  { %2382 = vmatmul.mubr.msk.f32.gmra.mrb[14].mxu0 %vm57_vm0, %v43_v26 }
  0x29   :  { %2384 = vmatprep.mubr.msk.f32.mxu0 %vm57_vm0, %v44_v7 }
  0x2c   :  { %2385 = vmatmul.mubr.msk.f32.gmra.mrb[16].mxu0 %vm57_vm0, %v45_v13 }
  0x2d   :  { %2387 = vmatprep.mubr.msk.f32.mxu0 %vm57_vm0, %v46_v16  ;;  %v2862_v16 = vld [vmem:[%s3677_s7 + $0x20] sm:$0xff] }
  0x2e   :  { %2438 = vmatprep.subr.mxu0 %v2862_v16 }
  0x2f   :  { %2439 = vmatpush3.msra.mxu0 %v2862_v16 }
  0x30   :  { %2388 = vmatmul.mubr.msk.f32.gmra.mrb[18].mxu0 %vm57_vm0, %v47_v19 }
  0x31   :  { %2390 = vmatprep.mubr.msk.f32.mxu0 %vm57_vm0, %v48_v21 }
  0x34   :  { %2391 = vmatmul.mubr.msk.f32.gmra.mrb[20].mxu0 %vm57_vm0, %v49_v23 }
  0x35   :  { %2393 = vmatprep.mubr.msk.f32.mxu0 %vm57_vm0, %v50_v25 }
  0x38   :  { %2394 = vmatmul.mubr.msk.f32.gmra.mrb[22].mxu0 %vm57_vm0, %v51_v27 }
  0xdf   :  { %v2803_v42 = vpop.f32.mrb[0].mxu0  ;;  %v2805_v43 = vpop.f32.mrb[0].mxu1 }
  0xe0   :  { %v252_v44 = vsel %vm57_vm0, %v2803_v42, 0.0  ;;  %v2809_v45 = vpop.f32.mrb[1].mxu0  ;;  %v2811_v46 = vpop.f32.mrb[1].mxu1  ;;  %v268_v14 = vsel %vm57_vm0, %v2805_v43, 0.0 }
  0xe1   :  { %v251_v47 = vsel %vm57_vm0, %v2809_v45, 0.0  ;;  %v266_v11 = vsel %vm57_vm0, %v2811_v46, 0.0 }
  0xe2   :  { %v253_v48 = vadd.f32 %v252_v44, %v251_v47 }
  0xe3   :  { %v2818_v49 = vpop.f32.mrb[2].mxu0  ;;  %v2820_v50 = vpop.f32.mrb[2].mxu1 }
  0xe4   :  { %v2822_v51 = vpop.f32.mrb[3].mxu0  ;;  %v2824_v52 = vpop.f32.mrb[3].mxu1  ;;  %v256_v55 = vsel %vm57_vm0, %v2818_v49, 0.0  ;;  %v272_v19 = vsel %vm57_vm0, %v2820_v50, 0.0 }
  0xe5   :  { %v254_v53 = vsel %vm57_vm0, %v2822_v51, 0.0  ;;  %v270_v15 = vsel %vm57_vm0, %v2824_v52, 0.0 }
  0xe6   :  { %v255_v54 = vadd.f32 %v254_v53, %v253_v48 }
  0xe7   :  { %v2830_v56 = vpop.f32.mrb[4].mxu0  ;;  %v2832_v57 = vpop.f32.mrb[4].mxu1 }
  0xe8   :  { %v192_v60 = vpop.f32.mrb[5].mxu0  ;;  %v257_v61 = vadd.f32 %v256_v55, %v255_v54  ;;  %v2840_v62 = vpop.f32.mrb[5].mxu1  ;;  %v260_v2 = vsel %vm57_vm0, %v2830_v56, 0.0  ;;  %v276_v26 = vsel %vm57_vm0, %v2832_v57, 0.0 }
  0xe9   :  { %v258_v0 = vsel %vm57_vm0, %v192_v60, 0.0  ;;  %v274_v20 = vsel %vm57_vm0, %v2840_v62, 0.0 }
  0xea   :  { %v259_v1 = vadd.f32 %v258_v0, %v257_v61 }
  0xeb   :  { %v2319_v3 = vpop.f32.mrb[6].mxu0  ;;  %v2848_v4 = vpop.f32.mrb[6].mxu1 }
  0xec   :  { %v202_v5 = vpop.f32.mrb[7].mxu0  ;;  %v261_v6 = vadd.f32 %v260_v2, %v259_v1  ;;  %v242_v7 = vpop.f32.mrb[7].mxu1  ;;  %v264_v10 = vsel %vm57_vm0, %v2319_v3, 0.0  ;;  %v280_v33 = vsel %vm57_vm0, %v2848_v4, 0.0 }
  0xed   :  { %v262_v8 = vsel %vm57_vm0, %v202_v5, 0.0  ;;  %v278_v27 = vsel %vm57_vm0, %v242_v7, 0.0 }
  0xee   :  { %v263_v9 = vadd.f32 %v262_v8, %v261_v6 }
  0xef   :  { %v2870_v21 = vpop.f32.mrb[8].mxu0 }
  0xf0   :  { %v265_v12 = vadd.f32 %v264_v10, %v263_v9  ;;  %v2872_v23 = vpop.f32.mrb[9].mxu0 }
  0xf2   :  { %v267_v13 = vadd.f32 %v266_v11, %v265_v12 }
  0xf3   :  { %v2874_v25 = vpop.f32.mrb[10].mxu0 }
  0xf4   :  { %v269_v17 = vadd.f32 %v268_v14, %v267_v13  ;;  %v2879_v28 = vpop.f32.mrb[11].mxu0 }
  0xf6   :  { %v271_v18 = vadd.f32 %v270_v15, %v269_v17 }
  0xf7   :  { %v2881_v32 = vpop.f32.mrb[12].mxu0 }
  0xf8   :  { %v273_v22 = vadd.f32 %v272_v19, %v271_v18  ;;  %v2885_v34 = vpop.f32.mrb[13].mxu0 }
  0xfa   :  { %v275_v24 = vadd.f32 %v274_v20, %v273_v22 }
  0xfb   :  { %v2887_v39 = vpop.f32.mrb[14].mxu0 }
  0xfc   :  { %v277_v30 = vadd.f32 %v276_v26, %v275_v24  ;;  %v2889_v40 = vpop.f32.mrb[15].mxu0 }
  0xfe   :  { %v279_v31 = vadd.f32 %v278_v27, %v277_v30 }
  0xff   :  { %v2891_v48 = vpop.f32.mrb[16].mxu0 }
 0x100   :  { %v281_v35 = vadd.f32 %v280_v33, %v279_v31  ;;  %v2893_v53 = vpop.f32.mrb[17].mxu0 }
 0x102   :  { %v282_v37 = vrot.slane %v281_v35, 4 }
 0x103   :  { %v2895_v58 = vpop.f32.mrb[18].mxu0 }
 0x104   :  { %v283_v44 = vadd.f32 %v282_v37, %v281_v35  ;;  %v2897_v59 = vpop.f32.mrb[19].mxu0 }
 0x106   :  { %v284_v47 = vrot.slane %v283_v44, 2 }
 0x107   :  { %v2899_v1 = vpop.f32.mrb[20].mxu0 }
 0x108   :  { %v285_v54 = vadd.f32 %v284_v47, %v283_v44  ;;  %v2901_v2 = vpop.f32.mrb[21].mxu0 }
 0x10a   :  { %v286_v55 = vrot.slane %v285_v54, 1 }
 0x10c   :  { %v287_v61 = vadd.f32 %v286_v55, %v285_v54 }
 0x10e   :  { %v288_v0 = vmul.f32 0.0078125, %v287_v61 }
 0x110   :  { %v2904_v6 = vsub.f32 %v2809_v45, %v288_v0  ;;  %v2907_v8 = vsub.f32 %v2803_v42, %v288_v0  ;;  %v2910_v9 = vsub.f32 %v2822_v51, %v288_v0  ;;  %v2913_v10 = vsub.f32 %v2818_v49, %v288_v0 }
 0x111   :  { %v2915_v11 = vsub.f32 %v192_v60, %v288_v0  ;;  %v2918_v12 = vsub.f32 %v2830_v56, %v288_v0  ;;  %v2920_v13 = vsub.f32 %v202_v5, %v288_v0  ;;  %v2922_v14 = vsub.f32 %v2319_v3, %v288_v0  ;;  %v2936_v60 = vpop.f32.mrb[22].mxu0 }
 0x112   :  { %v2925_v45 = vsub.f32 %v2811_v46, %v288_v0  ;;  %v2928_v42 = vsub.f32 %v2805_v43, %v288_v0  ;;  %v2931_v51 = vsub.f32 %v2824_v52, %v288_v0  ;;  %v2934_v49 = vsub.f32 %v2820_v50, %v288_v0  ;;  %v2949_v43 = vpop.f32.mrb[23].mxu0 }
 0x113   :  { %v2939_v56 = vsub.f32 %v2840_v62, %v288_v0  ;;  %v2942_v3 = vsub.f32 %v2832_v57, %v288_v0  ;;  %v2944_v5 = vsub.f32 %v242_v7, %v288_v0  ;;  %v2947_v46 = vsub.f32 %v2848_v4, %v288_v0 }
 0x114   :  { %v305_v52 = vmul.f32 %v2904_v6, %v2904_v6  ;;  %v306_v50 = vmul.f32 %v2907_v8, %v2907_v8  ;;  %v307_v62 = vmul.f32 %v2910_v9, %v2910_v9  ;;  %v308_v57 = vmul.f32 %v2913_v10, %v2913_v10 }
 0x115   :  { %v309_v17 = vmul.f32 %v2915_v11, %v2915_v11  ;;  %v310_v20 = vmul.f32 %v2918_v12, %v2918_v12  ;;  %v311_v26 = vmul.f32 %v2920_v13, %v2920_v13  ;;  %v312_v31 = vmul.f32 %v2922_v14, %v2922_v14 }
 0x116   :  { %v321_v7 = vsel %vm57_vm0, %v305_v52, 0.0  ;;  %v322_v15 = vsel %vm57_vm0, %v306_v50, 0.0  ;;  %v324_v18 = vsel %vm57_vm0, %v307_v62, 0.0  ;;  %v326_v22 = vsel %vm57_vm0, %v308_v57, 0.0 }
 0x117   :  { %v323_v4 = vadd.f32 %v322_v15, %v321_v7  ;;  %v328_v27 = vsel %vm57_vm0, %v309_v17, 0.0  ;;  %v330_v33 = vsel %vm57_vm0, %v310_v20, 0.0  ;;  %v313_v37 = vmul.f32 %v2925_v45, %v2925_v45 }
 0x118   :  { %v332_v44 = vsel %vm57_vm0, %v311_v26, 0.0  ;;  %v314_v54 = vmul.f32 %v2928_v42, %v2928_v42  ;;  %v334_v55 = vsel %vm57_vm0, %v312_v31, 0.0  ;;  %v315_v0 = vmul.f32 %v2931_v51, %v2931_v51 }
 0x119   :  { %v325_v19 = vadd.f32 %v324_v18, %v323_v4  ;;  %v336_v52 = vsel %vm57_vm0, %v313_v37, 0.0  ;;  %v316_v62 = vmul.f32 %v2934_v49, %v2934_v49  ;;  %v317_v15 = vmul.f32 %v2939_v56, %v2939_v56 }
 0x11a   :  { %v338_v57 = vsel %vm57_vm0, %v314_v54, 0.0  ;;  %v340_v4 = vsel %vm57_vm0, %v315_v0, 0.0  ;;  %v318_v18 = vmul.f32 %v2942_v3, %v2942_v3 }
 0x11b   :  { %v327_v24 = vadd.f32 %v326_v22, %v325_v19  ;;  %v342_v19 = vsel %vm57_vm0, %v316_v62, 0.0  ;;  %v319_v22 = vmul.f32 %v2944_v5, %v2944_v5 }
 0x11d   :  { %v329_v30 = vadd.f32 %v328_v27, %v327_v24  ;;  %v344_v24 = vsel %vm57_vm0, %v317_v15, 0.0  ;;  %v320_v27 = vmul.f32 %v2947_v46, %v2947_v46  ;;  %v3006_v15 = vsub.s32 1, %v2772_v29 }
 0x11f   :  { %v331_v35 = vadd.f32 %v330_v33, %v329_v30  ;;  %v346_v30 = vsel %vm57_vm0, %v318_v18, 0.0  ;;  %v348_v33 = vsel %vm57_vm0, %v319_v22, 0.0  ;;  %v350_v37 = vsel %vm57_vm0, %v320_v27, 0.0 }
 0x121   :  { %v333_v47 = vadd.f32 %v332_v44, %v331_v35 }
 0x123   :  { %v335_v61 = vadd.f32 %v334_v55, %v333_v47 }
 0x125   :  { %v337_v50 = vadd.f32 %v336_v52, %v335_v61 }
 0x127   :  { %v339_v7 = vadd.f32 %v338_v57, %v337_v50  ;;  %v56_v57 = vld [vmem:[%s3672_s2] sm:$0x3] }
 0x129   :  { %v341_v17 = vadd.f32 %v340_v4, %v339_v7  ;;  %v3003_v7 = vsub.s32 0, %v2772_v29 }
 0x12b   :  { %v343_v20 = vadd.f32 %v342_v19, %v341_v17  ;;  %v3012_v19 = vrot.slane %v56_v57, %v3006_v15 }
 0x12d   :  { %v345_v26 = vadd.f32 %v344_v24, %v343_v20 }
 0x12f   :  { %v347_v31 = vadd.f32 %v346_v30, %v345_v26 }
 0x131   :  { %v349_v35 = vadd.f32 %v348_v33, %v347_v31 }
 0x133   :  { %v351_v44 = vadd.f32 %v350_v37, %v349_v35 }
 0x135   :  { %v352_v47 = vrot.slane %v351_v44, 4 }
 0x137   :  { %v353_v54 = vadd.f32 %v352_v47, %v351_v44 }
 0x139   :  { %v354_v55 = vrot.slane %v353_v54, 2 }
 0x13b   :  { %v355_v61 = vadd.f32 %v354_v55, %v353_v54 }
 0x13d   :  { %v356_v0 = vrot.slane %v355_v61, 1 }
 0x13f   :  { %v357_v52 = vadd.f32 %v356_v0, %v355_v61 }
 0x141   :  { %v358_v50 = vmul.f32 0.0078125, %v357_v52 }
 0x143   :  { %v359_v62 = vadd.f32 1e-05, %v358_v50 }
 0x145   :  { %2579 = vrsqrt.f32 %v359_v62 }
 0x14f   :  { %v2580_v4 = vpop.eup %2579 }
 0x150   :  { %v361_v17 = vmul.f32 %v2580_v4, %v56_v57 }
 0x152   :  { %v3009_v18 = vrot.slane %v361_v17, %v3003_v7 }
 0x154   :  { %v3016_v20 = vmul.f32 %v3009_v18, %v2944_v5  ;;  %v366_v22 = vmul.f32 %v3009_v18, %v2904_v6  ;;  %v367_v24 = vmul.f32 %v3009_v18, %v2907_v8  ;;  %v368_v29 = vmul.f32 %v3009_v18, %v2910_v9 }
 0x155   :  { %v369_v26 = vmul.f32 %v3009_v18, %v2913_v10  ;;  %v370_v27 = vmul.f32 %v3009_v18, %v2915_v11  ;;  %v372_v30 = vmul.f32 %v3009_v18, %v2920_v13  ;;  %v371_v9 = vmul.f32 %v3009_v18, %v2918_v12 }
 0x156   :  { %v386_v5 = vadd.f32 %v3012_v19, %v366_v22  ;;  %v387_v31 = vadd.f32 %v3012_v19, %v367_v24  ;;  %v388_v6 = vadd.f32 %v3012_v19, %v368_v29  ;;  %v373_v61 = vmul.f32 %v3009_v18, %v2922_v14 }
 0x157   :  { %v389_v8 = vadd.f32 %v3012_v19, %v369_v26  ;;  %v390_v33 = vadd.f32 %v3012_v19, %v370_v27  ;;  %v391_v47 = vadd.f32 %v3012_v19, %v371_v9  ;;  %v392_v12 = vadd.f32 %v3012_v19, %v372_v30 }
 0x158   :  { %vm402_vm1 = vcmp.gt.f32.partialorder %v386_v5, 0.0  ;;  %v418_v10 = vmul.f32 0.2, %v386_v5  ;;  %vm403_vm2 = vcmp.gt.f32.partialorder %v387_v31, 0.0  ;;  %v419_v11 = vmul.f32 0.2, %v387_v31 }
 0x159   :  { %vm404_vm3 = vcmp.gt.f32.partialorder %v388_v6, 0.0  ;;  %v420_v35 = vmul.f32 0.2, %v388_v6  ;;  %v421_v44 = vmul.f32 0.2, %v389_v8  ;;  %vm405_vm4 = vcmp.gt.f32.partialorder %v389_v8, 0.0 }
 0x15a   :  { %v434_v13 = vsel %vm402_vm1, %v386_v5, %v418_v10  ;;  %v435_v37 = vsel %vm403_vm2, %v387_v31, %v419_v11  ;;  %v422_v55 = vmul.f32 0.2, %v390_v33  ;;  %vm406_vm5 = vcmp.gt.f32.partialorder %v390_v33, 0.0 }
 0x15b   :  { %2340 = vmatprep.mubr.msk.f32.mxu1 %vm57_vm0, %v434_v13  ;;  %v436_v54 = vsel %vm404_vm3, %v388_v6, %v420_v35  ;;  %v374_v0 = vmul.f32 %v3009_v18, %v2925_v45  ;;  %v437_v52 = vsel %vm405_vm4, %v389_v8, %v421_v44  ;;  %v376_v50 = vmul.f32 %v3009_v18, %v2931_v51 }
 0x15c   :  { %2341 = vmatmul.mubr.msk.f32.vlgmr.msra.gmra.mrb[8].mxu1 %vm57_vm0, %v435_v37  ;;  %v423_v62 = vmul.f32 0.2, %v391_v47  ;;  %v393_v57 = vadd.f32 %v3012_v19, %v373_v61  ;;  %v375_v14 = vmul.f32 %v3009_v18, %v2928_v42  ;;  %v438_v4 = vsel %vm406_vm5, %v390_v33, %v422_v55 }
 0x15d   :  { %2551 = vmatpush3.bf16.msra.mxu1 %v2801_v41  ;;  %2343 = vmatprep.mubr.msk.f32.mxu1 %vm57_vm0, %v436_v54  ;;  %v378_v41 = vmul.f32 %v3009_v18, %v2939_v56  ;;  %vm407_vm6 = vcmp.gt.f32.partialorder %v391_v47, 0.0  ;;  %v424_v45 = vmul.f32 0.2, %v392_v12  ;;  %v394_v17 = vadd.f32 %v3012_v19, %v374_v0 }
 0x15e   :  { %2553 = vmatprep.subr.bf16.mxu1 %v2842_v63  ;;  %vm408_vm7 = vcmp.gt.f32.partialorder %v392_v12, 0.0  ;;  %v439_v51 = vsel %vm407_vm6, %v391_v47, %v423_v62  ;;  %v425_v22 = vmul.f32 0.2, %v393_v57  ;;  %v395_v42 = vadd.f32 %v3012_v19, %v375_v14 }
 0x15f   :  { %v377_v56 = vmul.f32 %v3009_v18, %v2934_v49  ;;  %v440_v24 = vsel %vm408_vm7, %v392_v12, %v424_v45  ;;  %vm409_vm8 = vcmp.gt.f32.partialorder %v393_v57, 0.0  ;;  %v426_v29 = vmul.f32 0.2, %v394_v17 }
 0x160   :  { %2344 = vmatmul.mubr.msk.f32.gmra.mrb[10].mxu1 %vm57_vm0, %v437_v52  ;;  %v396_v26 = vadd.f32 %v3012_v19, %v376_v50  ;;  %vm410_vm9 = vcmp.gt.f32.partialorder %v394_v17, 0.0  ;;  %v427_v27 = vmul.f32 0.2, %v395_v42  ;;  %v379_v5 = vmul.f32 %v3009_v18, %v2942_v3 }
 0x161   :  { %2346 = vmatprep.mubr.msk.f32.mxu1 %vm57_vm0, %v438_v4  ;;  %2555 = vmatpush3.bf16.msra.mxu1 %v2842_v63  ;;  %v441_v63 = vsel %vm409_vm8, %v393_v57, %v425_v22  ;;  %v397_v30 = vadd.f32 %v3012_v19, %v377_v56  ;;  %v442_v49 = vsel %vm410_vm9, %v394_v17, %v426_v29  ;;  %vm411_vm10 = vcmp.gt.f32.partialorder %v395_v42, 0.0 }
 0x162   :  { %2404 = vmatprep.subr.mxu1 %v2862_v16  ;;  %v428_v31 = vmul.f32 0.2, %v396_v26  ;;  %v398_v6 = vadd.f32 %v3012_v19, %v378_v41  ;;  %vm412_vm11 = vcmp.gt.f32.partialorder %v396_v26, 0.0  ;;  %v443_v8 = vsel %vm411_vm10, %v395_v42, %v427_v27 }
 0x163   :  { %v429_v33 = vmul.f32 0.2, %v397_v30  ;;  %v381_v9 = vmul.f32 %v3009_v18, %v2947_v46  ;;  %v400_v3 = vadd.f32 %v3012_v19, %v3016_v20  ;;  %vm413_vm12 = vcmp.gt.f32.partialorder %v397_v30, 0.0 }
 0x164   :  { %2347 = vmatmul.mubr.msk.f32.gmra.mrb[12].mxu1 %vm57_vm0, %v439_v51  ;;  %v444_v10 = vsel %vm412_vm11, %v396_v26, %v428_v31  ;;  %v430_v11 = vmul.f32 0.2, %v398_v6  ;;  %vm414_vm13 = vcmp.gt.f32.partialorder %v398_v6, 0.0  ;;  %v861_v18 = vrot.slane %v2790_v36, %v3003_v7 }
 0x165   :  { %2349 = vmatprep.mubr.msk.f32.mxu1 %vm57_vm0, %v440_v24  ;;  %2405 = vmatpush3.msra.mxu1 %v2862_v16  ;;  %v399_v16 = vadd.f32 %v3012_v19, %v379_v5  ;;  %v445_v35 = vsel %vm413_vm12, %v397_v30, %v429_v33  ;;  %v401_v37 = vadd.f32 %v3012_v19, %v381_v9  ;;  %v432_v46 = vmul.f32 0.2, %v400_v3 }
 0x166   :  { %v446_v44 = vsel %vm414_vm13, %v398_v6, %v430_v11  ;;  %vm416_vm15 = vcmp.gt.f32.partialorder %v400_v3, 0.0  ;;  %v3088_v19 = vadd.f32 %v2872_v23, %v861_v18  ;;  %vm1007_vm2 = vcmask 326656  }
 0x167   :  { %v431_v13 = vmul.f32 0.2, %v399_v16  ;;  %vm415_vm14 = vcmp.gt.f32.partialorder %v399_v16, 0.0  ;;  %v433_v47 = vmul.f32 0.2, %v401_v37  ;;  %v448_v54 = vsel %vm416_vm15, %v400_v3, %v432_v46 }
 0x168   :  { %2350 = vmatmul.mubr.msk.f32.gmra.mrb[14].mxu1 %vm57_vm0, %v441_v63  ;;  %vm417_vm1 = vcmp.gt.f32.partialorder %v401_v37, 0.0  ;;  %v3094_v36 = vadd.f32 %v2879_v28, %v861_v18  ;;  %v3097_v12 = vadd.f32 %v2870_v21, %v861_v18  ;;  %v3104_v23 = vadd.f32 %v2885_v34, %v861_v18 }
 0x169   :  { %2352 = vmatprep.mubr.msk.f32.mxu1 %vm57_vm0, %v442_v49  ;;  %v447_v20 = vsel %vm415_vm14, %v399_v16, %v431_v13  ;;  %v449_v55 = vsel %vm417_vm1, %v401_v37, %v433_v47  ;;  %v3107_v61 = vadd.f32 %v2874_v25, %v861_v18  ;;  %v3114_v21 = vadd.f32 %v2889_v40, %v861_v18 }
 0x16a   :  { %v3117_v28 = vadd.f32 %v2881_v32, %v861_v18  ;;  %v3124_v25 = vadd.f32 %v2893_v53, %v861_v18  ;;  %v3127_v34 = vadd.f32 %v2887_v39, %v861_v18  ;;  %v3134_v32 = vadd.f32 %v2897_v59, %v861_v18 }
 0x16b   :  { %v3137_v40 = vadd.f32 %v2891_v48, %v861_v18  ;;  %v3144_v39 = vadd.f32 %v2901_v2, %v861_v18  ;;  %v3147_v53 = vadd.f32 %v2895_v58, %v861_v18  ;;  %v3154_v48 = vadd.f32 %v2949_v43, %v861_v18  ;;  %v1608_v2 = vld [vmem:[%s3678_s8] sm:$0xff] }
 0x16c   :  { %2353 = vmatmul.mubr.msk.f32.gmra.mrb[16].mxu1 %vm57_vm0, %v443_v8  ;;  %v3157_v59 = vadd.f32 %v2899_v1, %v861_v18  ;;  %v3164_v58 = vadd.f32 %v2936_v60, %v861_v18  ;;  %2464 = vmatprep.subr.mxu1 %v1608_v2 }
 0x16d   :  { %2355 = vmatprep.mubr.msk.f32.mxu1 %vm57_vm0, %v444_v10 }
 0x170   :  { %2356 = vmatmul.mubr.msk.f32.gmra.mrb[18].mxu1 %vm57_vm0, %v445_v35 }
 0x171   :  { %2358 = vmatprep.mubr.msk.f32.mxu1 %vm57_vm0, %v446_v44 }
 0x174   :  { %2359 = vmatmul.mubr.msk.f32.gmra.mrb[20].mxu1 %vm57_vm0, %v447_v20 }
 0x175   :  { %2361 = vmatprep.mubr.msk.f32.mxu1 %vm57_vm0, %v448_v54 }
 0x178   :  { %2362 = vmatmul.mubr.msk.f32.gmra.mrb[22].mxu1 %vm57_vm0, %v449_v55  ;;  %vm648_vm0 = vcmask 64512  }
 0x179   :  { %2406 = vmatprep.mubr.msk.f32.mxu1 %vm1007_vm2, %v3088_v19 }
 0x17c   :  { %2407 = vmatmul.mubr.msk.f32.vlgmr.msra.gmra.mrb[24].mxu1 %vm1007_vm2, %v3097_v12 }
 0x17d   :  { %2409 = vmatprep.mubr.msk.f32.mxu1 %vm1007_vm2, %v3094_v36  ;;  %2465 = vmatpush3.msra.mxu1 %v1608_v2 }
 0x180   :  { %2410 = vmatmul.mubr.msk.f32.gmra.mrb[26].mxu1 %vm1007_vm2, %v3107_v61 }
 0x181   :  { %2412 = vmatprep.mubr.msk.f32.mxu1 %vm1007_vm2, %v3104_v23 }
 0x184   :  { %2413 = vmatmul.mubr.msk.f32.gmra.mrb[28].mxu1 %vm1007_vm2, %v3117_v28 }
 0x185   :  { %2415 = vmatprep.mubr.msk.f32.mxu1 %vm1007_vm2, %v3114_v21 }
 0x188   :  { %2416 = vmatmul.mubr.msk.f32.gmra.mrb[30].mxu1 %vm1007_vm2, %v3127_v34 }
 0x189   :  { %2418 = vmatprep.mubr.msk.f32.mxu1 %vm1007_vm2, %v3124_v25 }
 0x18c   :  { %2419 = vmatmul.mubr.msk.f32.gmra.mrb[32].mxu1 %vm1007_vm2, %v3137_v40 }
 0x18d   :  { %2421 = vmatprep.mubr.msk.f32.mxu1 %vm1007_vm2, %v3134_v32 }
 0x190   :  { %2422 = vmatmul.mubr.msk.f32.gmra.mrb[34].mxu1 %vm1007_vm2, %v3147_v53 }
 0x191   :  { %2424 = vmatprep.mubr.msk.f32.mxu1 %vm1007_vm2, %v3144_v39 }
 0x194   :  { %2425 = vmatmul.mubr.msk.f32.gmra.mrb[36].mxu1 %vm1007_vm2, %v3157_v59 }
 0x195   :  { %2427 = vmatprep.mubr.msk.f32.mxu1 %vm1007_vm2, %v3154_v48 }
 0x198   :  { %2428 = vmatmul.mubr.msk.f32.gmra.mrb[38].mxu1 %vm1007_vm2, %v3164_v58 }
 0x22f   :  { %v3171_v1 = vpop.f32.mrb[8].mxu1 }
 0x230   :  { %v650_v43 = vsel %vm648_vm0, %v3171_v1, 0.0  ;;  %v3175_v0 = vpop.f32.mrb[9].mxu1 }
 0x231   :  { %v649_v60 = vsel %vm648_vm0, %v3175_v0, 0.0 }
 0x232   :  { %v651_v52 = vadd.f32 %v650_v43, %v649_v60 }
 0x233   :  { %v3179_v50 = vpop.f32.mrb[10].mxu1 }
 0x234   :  { %v3181_v62 = vpop.f32.mrb[11].mxu1  ;;  %v654_v41 = vsel %vm648_vm0, %v3179_v50, 0.0 }
 0x235   :  { %v652_v57 = vsel %vm648_vm0, %v3181_v62, 0.0 }
 0x236   :  { %v653_v14 = vadd.f32 %v652_v57, %v651_v52 }
 0x237   :  { %v3187_v4 = vpop.f32.mrb[12].mxu1 }
 0x238   :  { %v3189_v45 = vpop.f32.mrb[13].mxu1  ;;  %v655_v17 = vadd.f32 %v654_v41, %v653_v14  ;;  %v658_v42 = vsel %vm648_vm0, %v3187_v4, 0.0 }
 0x239   :  { %v656_v51 = vsel %vm648_vm0, %v3189_v45, 0.0 }
 0x23a   :  { %v657_v22 = vadd.f32 %v656_v51, %v655_v17 }
 0x23b   :  { %v3195_v56 = vpop.f32.mrb[14].mxu1 }
 0x23c   :  { %v3197_v24 = vpop.f32.mrb[15].mxu1  ;;  %v659_v29 = vadd.f32 %v658_v42, %v657_v22  ;;  %v662_v27 = vsel %vm648_vm0, %v3195_v56, 0.0 }
 0x23d   :  { %v660_v26 = vsel %vm648_vm0, %v3197_v24, 0.0 }
 0x23e   :  { %v661_v63 = vadd.f32 %v660_v26, %v659_v29 }
 0x23f   :  { %v3203_v30 = vpop.f32.mrb[16].mxu1 }
 0x240   :  { %v609_v5 = vpop.f32.mrb[17].mxu1  ;;  %v663_v49 = vadd.f32 %v662_v27, %v661_v63  ;;  %v666_v8 = vsel %vm648_vm0, %v3203_v30, 0.0 }
 0x241   :  { %v664_v31 = vsel %vm648_vm0, %v609_v5, 0.0 }
 0x242   :  { %v665_v6 = vadd.f32 %v664_v31, %v663_v49 }
 0x243   :  { %v2357_v33 = vpop.f32.mrb[18].mxu1 }
 0x244   :  { %v619_v16 = vpop.f32.mrb[19].mxu1  ;;  %v667_v9 = vadd.f32 %v666_v8, %v665_v6  ;;  %v670_v11 = vsel %vm648_vm0, %v2357_v33, 0.0 }
 0x245   :  { %v668_v3 = vsel %vm648_vm0, %v619_v16, 0.0 }
 0x246   :  { %v669_v10 = vadd.f32 %v668_v3, %v667_v9 }
 0x247   :  { %v2360_v35 = vpop.f32.mrb[20].mxu1 }
 0x248   :  { %v629_v13 = vpop.f32.mrb[21].mxu1  ;;  %v671_v37 = vadd.f32 %v670_v11, %v669_v10  ;;  %v674_v18 = vsel %vm648_vm0, %v2360_v35, 0.0 }
 0x249   :  { %v672_v44 = vsel %vm648_vm0, %v629_v13, 0.0 }
 0x24a   :  { %v673_v46 = vadd.f32 %v672_v44, %v671_v37 }
 0x24b   :  { %v2363_v20 = vpop.f32.mrb[22].mxu1 }
 0x24c   :  { %v639_v47 = vpop.f32.mrb[23].mxu1  ;;  %v675_v54 = vadd.f32 %v674_v18, %v673_v46  ;;  %v678_v43 = vsel %vm648_vm0, %v2363_v20, 0.0 }
 0x24d   :  { %v676_v55 = vsel %vm648_vm0, %v639_v47, 0.0 }
 0x24e   :  { %v677_v2 = vadd.f32 %v676_v55, %v675_v54 }
 0x24f   :  { %v2408_v60 = vpop.f32.mrb[24].mxu1 }
 0x250   :  { %v679_v52 = vadd.f32 %v678_v43, %v677_v2  ;;  %v1202_v57 = vsel %vm1007_vm2, %v2408_v60, 0.0  ;;  %v1122_v14 = vpop.f32.mrb[25].mxu1 }
 0x251   :  { %v1201_v41 = vsel %vm1007_vm2, %v1122_v14, 0.0 }
 0x252   :  { %v680_v17 = vrot.slane %v679_v52, 4  ;;  %v1203_v51 = vadd.f32 %v1202_v57, %v1201_v41 }
 0x253   :  { %v2411_v22 = vpop.f32.mrb[26].mxu1 }
 0x254   :  { %v681_v42 = vadd.f32 %v680_v17, %v679_v52  ;;  %v1132_v29 = vpop.f32.mrb[27].mxu1  ;;  %v1206_v49 = vsel %vm1007_vm2, %v2411_v22, 0.0 }
 0x255   :  { %v1204_v26 = vsel %vm1007_vm2, %v1132_v29, 0.0 }
 0x256   :  { %v682_v63 = vrot.slane %v681_v42, 2  ;;  %v1205_v27 = vadd.f32 %v1204_v26, %v1203_v51 }
 0x257   :  { %v2414_v31 = vpop.f32.mrb[28].mxu1 }
 0x258   :  { %v683_v6 = vadd.f32 %v682_v63, %v681_v42  ;;  %v1142_v8 = vpop.f32.mrb[29].mxu1  ;;  %v1207_v9 = vadd.f32 %v1206_v49, %v1205_v27  ;;  %v1210_v37 = vsel %vm1007_vm2, %v2414_v31, 0.0 }
 0x259   :  { %v1208_v3 = vsel %vm1007_vm2, %v1142_v8, 0.0 }
 0x25a   :  { %v684_v10 = vrot.slane %v683_v6, 1  ;;  %v1209_v11 = vadd.f32 %v1208_v3, %v1207_v9 }
 0x25b   :  { %v2417_v44 = vpop.f32.mrb[30].mxu1 }
 0x25c   :  { %v685_v46 = vadd.f32 %v684_v10, %v683_v6  ;;  %v1152_v18 = vpop.f32.mrb[31].mxu1  ;;  %v1211_v54 = vadd.f32 %v1210_v37, %v1209_v11  ;;  %v1214_v8 = vsel %vm1007_vm2, %v2417_v44, 0.0 }
 0x25d   :  { %v1212_v55 = vsel %vm1007_vm2, %v1152_v18, 0.0 }
 0x25e   :  { %v686_v2 = vmul.f32 0.0078125, %v685_v46  ;;  %v1213_v43 = vadd.f32 %v1212_v55, %v1211_v54 }
 0x25f   :  { %v2420_v60 = vpop.f32.mrb[32].mxu1 }
 0x260   :  { %v3222_v52 = vsub.f32 %v3175_v0, %v686_v2  ;;  %v3225_v57 = vsub.f32 %v3171_v1, %v686_v2  ;;  %v3228_v14 = vsub.f32 %v3181_v62, %v686_v2  ;;  %v3231_v41 = vsub.f32 %v3179_v50, %v686_v2  ;;  %v1162_v17 = vpop.f32.mrb[33].mxu1 }
 0x261   :  { %v3234_v51 = vsub.f32 %v3189_v45, %v686_v2  ;;  %v3237_v22 = vsub.f32 %v3187_v4, %v686_v2  ;;  %v3240_v42 = vsub.f32 %v3197_v24, %v686_v2  ;;  %v3243_v0 = vsub.f32 %v3195_v56, %v686_v2 }
 0x262   :  { %v3245_v1 = vsub.f32 %v609_v5, %v686_v2  ;;  %v3248_v62 = vsub.f32 %v3203_v30, %v686_v2  ;;  %v3250_v50 = vsub.f32 %v619_v16, %v686_v2  ;;  %v3252_v29 = vsub.f32 %v2357_v33, %v686_v2 }
 0x263   :  { %v3254_v45 = vsub.f32 %v629_v13, %v686_v2  ;;  %v3256_v26 = vsub.f32 %v2360_v35, %v686_v2  ;;  %v3258_v4 = vsub.f32 %v639_v47, %v686_v2  ;;  %v3260_v24 = vsub.f32 %v2363_v20, %v686_v2  ;;  %v2423_v63 = vpop.f32.mrb[34].mxu1 }
 0x264   :  { %v703_v56 = vmul.f32 %v3222_v52, %v3222_v52  ;;  %v704_v30 = vmul.f32 %v3225_v57, %v3225_v57  ;;  %v1172_v5 = vpop.f32.mrb[35].mxu1  ;;  %v705_v33 = vmul.f32 %v3228_v14, %v3228_v14  ;;  %v706_v35 = vmul.f32 %v3231_v41, %v3231_v41 }
 0x265   :  { %v707_v49 = vmul.f32 %v3234_v51, %v3234_v51  ;;  %v708_v3 = vmul.f32 %v3237_v22, %v3237_v22  ;;  %v1215_v11 = vadd.f32 %v1214_v8, %v1213_v43  ;;  %v1216_v18 = vsel %vm1007_vm2, %v1162_v17, 0.0 }
 0x266   :  { %v719_v13 = vsel %vm648_vm0, %v703_v56, 0.0  ;;  %v720_v20 = vsel %vm648_vm0, %v704_v30, 0.0  ;;  %v722_v31 = vsel %vm648_vm0, %v705_v33, 0.0  ;;  %v724_v10 = vsel %vm648_vm0, %v706_v35, 0.0 }
 0x267   :  { %v2426_v16 = vpop.f32.mrb[36].mxu1  ;;  %v721_v27 = vadd.f32 %v720_v20, %v719_v13  ;;  %v709_v54 = vmul.f32 %v3240_v42, %v3240_v42  ;;  %v726_v55 = vsel %vm648_vm0, %v707_v49, 0.0  ;;  %v1217_v2 = vadd.f32 %v1216_v18, %v1215_v11 }
 0x268   :  { %v1182_v47 = vpop.f32.mrb[37].mxu1  ;;  %v1218_v44 = vsel %vm1007_vm2, %v2420_v60, 0.0  ;;  %v1220_v30 = vsel %vm1007_vm2, %v1172_v5, 0.0  ;;  %v710_v33 = vmul.f32 %v3243_v0, %v3243_v0  ;;  %v728_v43 = vsel %vm648_vm0, %v708_v3, 0.0 }
 0x269   :  { %v723_v6 = vadd.f32 %v722_v31, %v721_v27  ;;  %v1219_v35 = vadd.f32 %v1218_v44, %v1217_v2  ;;  %v711_v17 = vmul.f32 %v3245_v1, %v3245_v1  ;;  %v730_v20 = vsel %vm648_vm0, %v709_v54, 0.0 }
 0x26a   :  { %v1222_v31 = vsel %vm1007_vm2, %v2423_v63, 0.0  ;;  %v1224_v60 = vsel %vm1007_vm2, %v1182_v47, 0.0  ;;  %v712_v5 = vmul.f32 %v3248_v62, %v3248_v62  ;;  %v1226_v54 = vsel %vm1007_vm2, %v2426_v16, 0.0 }
 0x26b   :  { %v2429_v9 = vpop.f32.mrb[38].mxu1  ;;  %v725_v46 = vadd.f32 %v724_v10, %v723_v6  ;;  %v1221_v27 = vadd.f32 %v1220_v30, %v1219_v35  ;;  %v732_v6 = vsel %vm648_vm0, %v710_v33, 0.0  ;;  %v713_v10 = vmul.f32 %v3250_v50, %v3250_v50 }
 0x26c   :  { %v1192_v37 = vpop.f32.mrb[39].mxu1  ;;  %v734_v11 = vsel %vm648_vm0, %v711_v17, 0.0  ;;  %v714_v47 = vmul.f32 %v3252_v29, %v3252_v29  ;;  %v715_v44 = vmul.f32 %v3254_v45, %v3254_v45  ;;  %v1230_v35 = vsel %vm1007_vm2, %v2429_v9, 0.0 }
 0x26d   :  { %v727_v56 = vadd.f32 %v726_v55, %v725_v46  ;;  %v1223_v8 = vadd.f32 %v1222_v31, %v1221_v27  ;;  %v1228_v63 = vsel %vm1007_vm2, %v1192_v37, 0.0  ;;  %v736_v55 = vsel %vm648_vm0, %v712_v5, 0.0 }
 0x26e   :  { %v738_v30 = vsel %vm648_vm0, %v713_v10, 0.0  ;;  %v716_v16 = vmul.f32 %v3256_v26, %v3256_v26  ;;  %v740_v37 = vsel %vm648_vm0, %v714_v47, 0.0  ;;  %v742_v27 = vsel %vm648_vm0, %v715_v44, 0.0 }
 0x26f   :  { %v729_v13 = vadd.f32 %v728_v43, %v727_v56  ;;  %v1225_v46 = vadd.f32 %v1224_v60, %v1223_v8  ;;  %v718_v60 = vmul.f32 %v3260_v24, %v3260_v24 }
 0x270   :  { %v744_v5 = vsel %vm648_vm0, %v716_v16, 0.0 }
 0x271   :  { %v731_v49 = vadd.f32 %v730_v20, %v729_v13  ;;  %v1227_v2 = vadd.f32 %v1226_v54, %v1225_v46  ;;  %v717_v20 = vmul.f32 %v3258_v4, %v3258_v4 }
 0x273   :  { %v733_v3 = vadd.f32 %v732_v6, %v731_v49  ;;  %v1229_v33 = vadd.f32 %v1228_v63, %v1227_v2  ;;  %v746_v8 = vsel %vm648_vm0, %v717_v20, 0.0 }
 0x275   :  { %v735_v18 = vadd.f32 %v734_v11, %v733_v3  ;;  %v1231_v13 = vadd.f32 %v1230_v35, %v1229_v33  ;;  %v748_v11 = vsel %vm648_vm0, %v718_v60, 0.0 }
 0x277   :  { %v737_v56 = vadd.f32 %v736_v55, %v735_v18  ;;  %v1232_v49 = vrot.slane %v1231_v13, 4 }
 0x279   :  { %v739_v43 = vadd.f32 %v738_v30, %v737_v56  ;;  %v1233_v9 = vadd.f32 %v1232_v49, %v1231_v13 }
 0x27b   :  { %v741_v17 = vadd.f32 %v740_v37, %v739_v43  ;;  %v1234_v3 = vrot.slane %v1233_v9, 2 }
 0x27d   :  { %v743_v31 = vadd.f32 %v742_v27, %v741_v17  ;;  %v1235_v46 = vadd.f32 %v1234_v3, %v1233_v9 }
 0x27f   :  { %v745_v6 = vadd.f32 %v744_v5, %v743_v31  ;;  %v1236_v54 = vrot.slane %v1235_v46, 1 }
 0x281   :  { %v747_v10 = vadd.f32 %v746_v8, %v745_v6  ;;  %v1237_v47 = vadd.f32 %v1236_v54, %v1235_v46 }
 0x283   :  { %v749_v18 = vadd.f32 %v748_v11, %v747_v10  ;;  %v1238_v2 = vmul.f32 0.0009765625, %v1237_v47 }
 0x285   :  { %v750_v63 = vrot.slane %v749_v18, 4  ;;  %v3320_v44 = vsub.f32 %v3088_v19, %v1238_v2  ;;  %v3323_v30 = vsub.f32 %v3097_v12, %v1238_v2  ;;  %v3326_v33 = vsub.f32 %v3094_v36, %v1238_v2 }
 0x286   :  { %v3333_v13 = vsub.f32 %v3107_v61, %v1238_v2  ;;  %v3339_v12 = vsub.f32 %v3104_v23, %v1238_v2  ;;  %v3346_v61 = vsub.f32 %v3117_v28, %v1238_v2  ;;  %v3351_v49 = vsub.f32 %v3114_v21, %v1238_v2 }
 0x287   :  { %v751_v55 = vadd.f32 %v750_v63, %v749_v18  ;;  %v1255_v35 = vmul.f32 %v3320_v44, %v3320_v44  ;;  %v1256_v16 = vmul.f32 %v3323_v30, %v3323_v30  ;;  %v1257_v19 = vmul.f32 %v3326_v33, %v3326_v33 }
 0x288   :  { %v1258_v20 = vmul.f32 %v3333_v13, %v3333_v13  ;;  %v1259_v27 = vmul.f32 %v3339_v12, %v3339_v12  ;;  %v1260_v31 = vmul.f32 %v3346_v61, %v3346_v61  ;;  %v3358_v60 = vsub.f32 %v3127_v34, %v1238_v2 }
 0x289   :  { %v752_v56 = vrot.slane %v751_v55, 2  ;;  %2440 = vmatprep.mubr.msk.f32.mxu0 %vm1007_vm2, %v1255_v35  ;;  %v1261_v28 = vmul.f32 %v3351_v49, %v3351_v49  ;;  %v3363_v5 = vsub.f32 %v3124_v25, %v1238_v2  ;;  %v3370_v9 = vsub.f32 %v3137_v40, %v1238_v2  ;;  %v454_v25 = vld [vmem:[%s3674_s4] sm:$0x3] }
 0x28a   :  { %2441 = vmatmul.mubr.msk.f32.vlgmr.msra.gmra.mrb[24].mxu0 %vm1007_vm2, %v1256_v16  ;;  %v1262_v21 = vmul.f32 %v3358_v60, %v3358_v60  ;;  %v3375_v6 = vsub.f32 %v3134_v32, %v1238_v2  ;;  %v3385_v40 = vsub.f32 %v3147_v53, %v1238_v2  ;;  %v3390_v32 = vsub.f32 %v3144_v39, %v1238_v2 }
 0x28b   :  { %v753_v43 = vadd.f32 %v752_v56, %v751_v55  ;;  %2443 = vmatprep.mubr.msk.f32.mxu0 %vm1007_vm2, %v1257_v19  ;;  %v1263_v34 = vmul.f32 %v3363_v5, %v3363_v5  ;;  %v1264_v8 = vmul.f32 %v3370_v9, %v3370_v9  ;;  %v3394_v11 = vsub.f32 %v3157_v59, %v1238_v2 }
 0x28c   :  { %v1265_v3 = vmul.f32 %v3375_v6, %v3375_v6  ;;  %v1266_v18 = vmul.f32 %v3385_v40, %v3385_v40  ;;  %v3403_v54 = vrot.slane %v454_v25, %v3006_v15  ;;  %v1267_v39 = vmul.f32 %v3390_v32, %v3390_v32 }
 0x28d   :  { %v754_v37 = vrot.slane %v753_v43, 1  ;;  %v3408_v63 = vsub.f32 %v3154_v48, %v1238_v2  ;;  %v1268_v59 = vmul.f32 %v3394_v11, %v3394_v11  ;;  %v3425_v56 = vsub.f32 %v3164_v58, %v1238_v2 }
 0x28e   :  { %2444 = vmatmul.mubr.msk.f32.gmra.mrb[26].mxu0 %vm1007_vm2, %v1258_v20 }
 0x28f   :  { %v755_v36 = vadd.f32 %v754_v37, %v753_v43  ;;  %2446 = vmatprep.mubr.msk.f32.mxu0 %vm1007_vm2, %v1259_v27  ;;  %v1270_v37 = vmul.f32 %v3425_v56, %v3425_v56 }
 0x291   :  { %v756_v17 = vmul.f32 0.0078125, %v755_v36 }
 0x292   :  { %2447 = vmatmul.mubr.msk.f32.gmra.mrb[28].mxu0 %vm1007_vm2, %v1260_v31 }
 0x293   :  { %v757_v23 = vadd.f32 1e-05, %v756_v17  ;;  %2449 = vmatprep.mubr.msk.f32.mxu0 %vm1007_vm2, %v1261_v28 }
 0x295   :  { %2581 = vrsqrt.f32 %v757_v23 }
 0x296   :  { %2450 = vmatmul.mubr.msk.f32.gmra.mrb[30].mxu0 %vm1007_vm2, %v1262_v21 }
 0x297   :  { %2452 = vmatprep.mubr.msk.f32.mxu0 %vm1007_vm2, %v1263_v34 }
 0x29a   :  { %2453 = vmatmul.mubr.msk.f32.gmra.mrb[32].mxu0 %vm1007_vm2, %v1264_v8 }
 0x29b   :  { %2455 = vmatprep.mubr.msk.f32.mxu0 %vm1007_vm2, %v1265_v3 }
 0x29e   :  { %2456 = vmatmul.mubr.msk.f32.gmra.mrb[34].mxu0 %vm1007_vm2, %v1266_v18 }
 0x29f   :  { %v2582_v10 = vpop.eup %2581  ;;  %2458 = vmatprep.mubr.msk.f32.mxu0 %vm1007_vm2, %v1267_v39 }
 0x2a0   :  { %v759_v46 = vmul.f32 %v2582_v10, %v454_v25 }
 0x2a2   :  { %v3400_v53 = vrot.slane %v759_v46, %v3003_v7  ;;  %2459 = vmatmul.mubr.msk.f32.gmra.mrb[36].mxu0 %vm1007_vm2, %v1268_v59 }
 0x2a4   :  { %v3415_v47 = vmul.f32 %v3400_v53, %v3258_v4  ;;  %v764_v7 = vmul.f32 %v3400_v53, %v3222_v52  ;;  %v765_v55 = vmul.f32 %v3400_v53, %v3225_v57  ;;  %v766_v48 = vmul.f32 %v3400_v53, %v3228_v14 }
 0x2a5   :  { %v767_v43 = vmul.f32 %v3400_v53, %v3231_v41  ;;  %v768_v4 = vmul.f32 %v3400_v53, %v3234_v51  ;;  %v770_v35 = vmul.f32 %v3400_v53, %v3240_v42  ;;  %v1269_v52 = vmul.f32 %v3408_v63, %v3408_v63 }
 0x2a6   :  { %v784_v57 = vadd.f32 %v3403_v54, %v764_v7  ;;  %v785_v16 = vadd.f32 %v3403_v54, %v765_v55  ;;  %v786_v14 = vadd.f32 %v3403_v54, %v766_v48  ;;  %v769_v51 = vmul.f32 %v3400_v53, %v3237_v22 }
 0x2a7   :  { %v787_v58 = vadd.f32 %v3403_v54, %v767_v43  ;;  %v788_v41 = vadd.f32 %v3403_v54, %v768_v4  ;;  %2461 = vmatprep.mubr.msk.f32.mxu0 %vm1007_vm2, %v1269_v52  ;;  %v790_v27 = vadd.f32 %v3403_v54, %v770_v35  ;;  %v771_v28 = vmul.f32 %v3400_v53, %v3243_v0 }
 0x2a8   :  { %vm800_vm3 = vcmp.gt.f32.partialorder %v784_v57, 0.0  ;;  %v816_v42 = vmul.f32 0.2, %v784_v57  ;;  %vm801_vm4 = vcmp.gt.f32.partialorder %v785_v16, 0.0  ;;  %v817_v2 = vmul.f32 0.2, %v785_v16  ;;  %2462 = vmatmul.mubr.msk.f32.gmra.mrb[38].mxu0 %vm1007_vm2, %v1270_v37 }
 0x2a9   :  { %vm802_vm5 = vcmp.gt.f32.partialorder %v786_v14, 0.0  ;;  %v818_v19 = vmul.f32 0.2, %v786_v14  ;;  %v819_v20 = vmul.f32 0.2, %v787_v58  ;;  %v789_v22 = vadd.f32 %v3403_v54, %v769_v51 }
 0x2aa   :  { %v832_v36 = vsel %vm800_vm3, %v784_v57, %v816_v42  ;;  %v833_v17 = vsel %vm801_vm4, %v785_v16, %v817_v2  ;;  %vm803_vm6 = vcmp.gt.f32.partialorder %v787_v58, 0.0  ;;  %v820_v31 = vmul.f32 0.2, %v788_v41 }
 0x2ab   :  { %2466 = vmatprep.mubr.msk.f32.mxu1 %vm648_vm0, %v832_v36  ;;  %v834_v23 = vsel %vm802_vm5, %v786_v14, %v818_v19  ;;  %vm804_vm7 = vcmp.gt.f32.partialorder %v788_v41, 0.0  ;;  %v772_v21 = vmul.f32 %v3400_v53, %v3245_v1  ;;  %v774_v34 = vmul.f32 %v3400_v53, %v3250_v50 }
 0x2ac   :  { %2467 = vmatmul.mubr.msk.f32.vlgmr.msra.gmra.mrb[40].mxu1 %vm648_vm0, %v833_v17  ;;  %v776_v25 = vmul.f32 %v3400_v53, %v3254_v45  ;;  %v835_v8 = vsel %vm803_vm6, %v787_v58, %v819_v20  ;;  %v821_v3 = vmul.f32 0.2, %v789_v22  ;;  %v791_v10 = vadd.f32 %v3403_v54, %v771_v28 }
 0x2ad   :  { %2469 = vmatprep.mubr.msk.f32.mxu1 %vm648_vm0, %v834_v23  ;;  %v773_v46 = vmul.f32 %v3400_v53, %v3248_v62  ;;  %v836_v0 = vsel %vm804_vm7, %v788_v41, %v820_v31  ;;  %vm805_vm8 = vcmp.gt.f32.partialorder %v789_v22, 0.0  ;;  %v822_v18 = vmul.f32 0.2, %v790_v27  ;;  %v1611_v23 = vld [vmem:[%s3679_s9 + $0x10] sm:$0xff]  ;;  %v1612_v31 = vld [vmem:[%s3679_s9 + $0x18] sm:$0xff] }
 0x2ae   :  { %v792_v1 = vadd.f32 %v3403_v54, %v772_v21  ;;  %vm806_vm9 = vcmp.gt.f32.partialorder %v790_v27, 0.0  ;;  %v837_v50 = vsel %vm805_vm8, %v789_v22, %v821_v3  ;;  %v823_v39 = vmul.f32 0.2, %v791_v10  ;;  %v1610_v22 = vld [vmem:[%s3679_s9 + $0x8] sm:$0xff]  ;;  %v1613_v21 = vld [vmem:[%s3679_s9 + $0x20] sm:$0xff] }
 0x2af   :  { %v793_v45 = vadd.f32 %v3403_v54, %v773_v46  ;;  %v775_v59 = vmul.f32 %v3400_v53, %v3252_v29  ;;  %v838_v62 = vsel %vm806_vm9, %v790_v27, %v822_v18  ;;  %vm807_vm10 = vcmp.gt.f32.partialorder %v791_v10, 0.0 }
 0x2b0   :  { %2470 = vmatmul.mubr.msk.f32.gmra.mrb[42].mxu1 %vm648_vm0, %v835_v8  ;;  %v824_v7 = vmul.f32 0.2, %v792_v1  ;;  %v794_v55 = vadd.f32 %v3403_v54, %v774_v34  ;;  %vm808_vm11 = vcmp.gt.f32.partialorder %v792_v1, 0.0  ;;  %v839_v48 = vsel %vm807_vm10, %v791_v10, %v823_v39 }
 0x2b1   :  { %2472 = vmatprep.mubr.msk.f32.mxu1 %vm648_vm0, %v836_v0  ;;  %v825_v43 = vmul.f32 0.2, %v793_v45  ;;  %v795_v4 = vadd.f32 %v3403_v54, %v775_v59  ;;  %v777_v35 = vmul.f32 %v3400_v53, %v3256_v26  ;;  %vm809_vm12 = vcmp.gt.f32.partialorder %v793_v45, 0.0 }
 0x2b2   :  { %v840_v29 = vsel %vm808_vm11, %v792_v1, %v824_v7  ;;  %v826_v52 = vmul.f32 0.2, %v794_v55  ;;  %v796_v57 = vadd.f32 %v3403_v54, %v776_v25  ;;  %vm810_vm13 = vcmp.gt.f32.partialorder %v794_v55, 0.0 }
 0x2b3   :  { %v841_v16 = vsel %vm809_vm12, %v793_v45, %v825_v43  ;;  %v827_v14 = vmul.f32 0.2, %v795_v4  ;;  %v797_v58 = vadd.f32 %v3403_v54, %v777_v35  ;;  %v779_v41 = vmul.f32 %v3400_v53, %v3260_v24 }
 0x2b4   :  { %2473 = vmatmul.mubr.msk.f32.gmra.mrb[44].mxu1 %vm648_vm0, %v837_v50  ;;  %v798_v26 = vadd.f32 %v3403_v54, %v3415_v47  ;;  %v842_v51 = vsel %vm810_vm13, %v794_v55, %v826_v52  ;;  %vm811_vm14 = vcmp.gt.f32.partialorder %v795_v4, 0.0  ;;  %v828_v42 = vmul.f32 0.2, %v796_v57 }
 0x2b5   :  { %2475 = vmatprep.mubr.msk.f32.mxu1 %vm648_vm0, %v838_v62  ;;  %vm812_vm15 = vcmp.gt.f32.partialorder %v796_v57, 0.0  ;;  %v843_v2 = vsel %vm811_vm14, %v795_v4, %v827_v14  ;;  %v829_v37 = vmul.f32 0.2, %v797_v58  ;;  %v799_v19 = vadd.f32 %v3403_v54, %v779_v41  ;;  %v1609_v54 = vld [vmem:[%s3679_s9] sm:$0xff] }
 0x2b6   :  { %v844_v36 = vsel %vm812_vm15, %v796_v57, %v828_v42  ;;  %vm813_vm1 = vcmp.gt.f32.partialorder %v797_v58, 0.0  ;;  %v830_v24 = vmul.f32 0.2, %v798_v26  ;;  %vm814_vm3 = vcmp.gt.f32.partialorder %v798_v26, 0.0 }
 0x2b7   :  { %v845_v53 = vsel %vm813_vm1, %v797_v58, %v829_v37  ;;  %v831_v47 = vmul.f32 0.2, %v799_v19  ;;  %vm815_vm4 = vcmp.gt.f32.partialorder %v799_v19, 0.0  ;;  %v2564_v27 = vpack.c.bf16 %v1610_v22, %v1609_v54 }
 0x2b8   :  { %2476 = vmatmul.mubr.msk.f32.gmra.mrb[46].mxu1 %vm648_vm0, %v839_v48  ;;  %v846_v17 = vsel %vm814_vm3, %v798_v26, %v830_v24  ;;  %v2568_v28 = vpack.c.bf16 %v1612_v31, %v1611_v23 }
 0x2b9   :  { %2478 = vmatprep.mubr.msk.f32.mxu1 %vm648_vm0, %v840_v29  ;;  %v847_v20 = vsel %vm815_vm4, %v799_v19, %v831_v47  ;;  %2565 = vmatprep.subr.bf16.mxu0 %v2564_v27 }
 0x2ba   :  { %2567 = vmatpush3.bf16.msra.mxu0 %v2564_v27 }
 0x2bb   :  { %2569 = vmatprep.subr.bf16.mxu0 %v2568_v28 }
 0x2bc   :  { %2479 = vmatmul.mubr.msk.f32.gmra.mrb[48].mxu1 %vm648_vm0, %v841_v16 }
 0x2bd   :  { %2481 = vmatprep.mubr.msk.f32.mxu1 %vm648_vm0, %v842_v51 }
 0x2be   :  { %2571 = vmatpush3.bf16.msra.mxu0 %v2568_v28 }
 0x2bf   :  { %2498 = vmatprep.subr.mxu0 %v1613_v21 }
 0x2c0   :  { %2482 = vmatmul.mubr.msk.f32.gmra.mrb[50].mxu1 %vm648_vm0, %v843_v2 }
 0x2c1   :  { %2484 = vmatprep.mubr.msk.f32.mxu1 %vm648_vm0, %v844_v36 }
 0x2c2   :  { %2499 = vmatpush3.msra.mxu0 %v1613_v21 }
 0x2c4   :  { %2485 = vmatmul.mubr.msk.f32.gmra.mrb[52].mxu1 %vm648_vm0, %v845_v53 }
 0x2c5   :  { %2487 = vmatprep.mubr.msk.f32.mxu1 %vm648_vm0, %v846_v17 }
 0x2c8   :  { %2488 = vmatmul.mubr.msk.f32.gmra.mrb[54].mxu1 %vm648_vm0, %v847_v20 }
 0x35d   :  { %v2442_v34 = vpop.f32.mrb[24].mxu0 }
 0x35e   :  { %v1465_v25 = vsel %vm1007_vm2, %v2442_v34, 0.0  ;;  %v1385_v8 = vpop.f32.mrb[25].mxu0 }
 0x35f   :  { %v1464_v3 = vsel %vm1007_vm2, %v1385_v8, 0.0 }
 0x360   :  { %v1466_v10 = vadd.f32 %v1465_v25, %v1464_v3 }
 0x361   :  { %v2445_v46 = vpop.f32.mrb[26].mxu0 }
 0x362   :  { %v1395_v0 = vpop.f32.mrb[27].mxu0  ;;  %v1469_v50 = vsel %vm1007_vm2, %v2445_v46, 0.0 }
 0x363   :  { %v1467_v18 = vsel %vm1007_vm2, %v1395_v0, 0.0 }
 0x364   :  { %v1468_v1 = vadd.f32 %v1467_v18, %v1466_v10 }
 0x365   :  { %v2448_v39 = vpop.f32.mrb[28].mxu0 }
 0x366   :  { %v1405_v45 = vpop.f32.mrb[29].mxu0  ;;  %v1470_v59 = vadd.f32 %v1469_v50, %v1468_v1  ;;  %v1473_v55 = vsel %vm1007_vm2, %v2448_v39, 0.0 }
 0x367   :  { %v1471_v62 = vsel %vm1007_vm2, %v1405_v45, 0.0 }
 0x368   :  { %v1472_v7 = vadd.f32 %v1471_v62, %v1470_v59 }
 0x369   :  { %v2451_v48 = vpop.f32.mrb[30].mxu0 }
 0x36a   :  { %v1415_v43 = vpop.f32.mrb[31].mxu0  ;;  %v1474_v4 = vadd.f32 %v1473_v55, %v1472_v7  ;;  %v1477_v52 = vsel %vm1007_vm2, %v2451_v48, 0.0 }
 0x36b   :  { %v1475_v35 = vsel %vm1007_vm2, %v1415_v43, 0.0 }
 0x36c   :  { %v1476_v29 = vadd.f32 %v1475_v35, %v1474_v4 }
 0x36d   :  { %v2454_v57 = vpop.f32.mrb[32].mxu0 }
 0x36e   :  { %v1425_v16 = vpop.f32.mrb[33].mxu0  ;;  %v1478_v14 = vadd.f32 %v1477_v52, %v1476_v29  ;;  %v1481_v26 = vsel %vm1007_vm2, %v2454_v57, 0.0 }
 0x36f   :  { %v1479_v58 = vsel %vm1007_vm2, %v1425_v16, 0.0 }
 0x370   :  { %v1480_v41 = vadd.f32 %v1479_v58, %v1478_v14  ;;  %v2585_v58 = vld [vmem:[%s3676_s6] sm:$0x7]  ;;  %s2610_s6 = smov [#allocation2]  }
 0x371   :  { %v2457_v51 = vpop.f32.mrb[34].mxu0  ;;  %s2037_s1 = sshll.u32 %s2610_s6, 4  ;;  %s2038_s1 = int_to_ptr.vmem [resolvable:$true] %s2037_s1 }
 0x372   :  { %v1435_v42 = vpop.f32.mrb[35].mxu0  ;;  %v1482_v2 = vadd.f32 %v1481_v26, %v1480_v41  ;;  %v1485_v36 = vsel %vm1007_vm2, %v2457_v51, 0.0  ;;  %v3558_v41 = vrot.slane %v2585_v58, %v3006_v15  ;;  %s2586_s25 = scalar_lea.vmem %s2038_s1, 2048  ;;  %p2591_p1 = scmp.lt.s32.totalorder %s2038_s1, %s2038_s1 }
 0x373   :  { %v1483_v37 = vsel %vm1007_vm2, %v1435_v42, 0.0  ;;  %p2587_p0 = scmp.ne.s32.totalorder %s2038_s1, %s2586_s25  ;;  %p2592_p2 = scmp.lt.s32.totalorder %s2586_s25, %s2586_s25 }
 0x374   :  { %v1484_v19 = vadd.f32 %v1483_v37, %v1482_v2 }
 0x375   :  { %v2460_v24 = vpop.f32.mrb[36].mxu0  ;;  %p2593_p3 = por %p2592_p2, %p2591_p1 }
 0x376   :  { %v1445_v53 = vpop.f32.mrb[37].mxu0  ;;  %v1486_v47 = vadd.f32 %v1485_v36, %v1484_v19  ;;  %v1489_v54 = vsel %vm1007_vm2, %v2460_v24, 0.0 }
 0x377   :  { %v1487_v17 = vsel %vm1007_vm2, %v1445_v53, 0.0  ;;  %p2594_p4 = pnand %p2593_p3, %p2587_p0 }
 0x378   :  { %v1488_v20 = vadd.f32 %v1487_v17, %v1486_v47 }
 0x37a   :  { %v1490_v23 = vadd.f32 %v1489_v54, %v1488_v20 }
 0x37b   :  { %v2463_v22 = vpop.f32.mrb[38].mxu0 }
 0x37c   :  { %v1455_v27 = vpop.f32.mrb[39].mxu0  ;;  %v1493_v25 = vsel %vm1007_vm2, %v2463_v22, 0.0 }
 0x37d   :  { %v1491_v28 = vsel %vm1007_vm2, %v1455_v27, 0.0 }
 0x37e   :  { %v1492_v34 = vadd.f32 %v1491_v28, %v1490_v23 }
 0x37f   :  { %v3520_v31 = vpop.f32.mrb[40].mxu1 }
 0x380   :  { %v3523_v21 = vpop.f32.mrb[41].mxu1  ;;  %v1494_v8 = vadd.f32 %v1493_v25, %v1492_v34 }
 0x382   :  { %v1495_v46 = vrot.slane %v1494_v8, 4 }
 0x383   :  { %v3526_v3 = vpop.f32.mrb[42].mxu1 }
 0x384   :  { %v3528_v10 = vpop.f32.mrb[43].mxu1  ;;  %v1496_v0 = vadd.f32 %v1495_v46, %v1494_v8 }
 0x386   :  { %v1497_v50 = vrot.slane %v1496_v0, 2 }
 0x387   :  { %v3530_v18 = vpop.f32.mrb[44].mxu1 }
 0x388   :  { %v3532_v1 = vpop.f32.mrb[45].mxu1  ;;  %v1498_v39 = vadd.f32 %v1497_v50, %v1496_v0 }
 0x38a   :  { %v1499_v62 = vrot.slane %v1498_v39, 1 }
 0x38b   :  { %v3534_v45 = vpop.f32.mrb[46].mxu1 }
 0x38c   :  { %v3536_v59 = vpop.f32.mrb[47].mxu1  ;;  %v1500_v7 = vadd.f32 %v1499_v62, %v1498_v39 }
 0x38e   :  { %v1501_v43 = vmul.f32 0.0009765625, %v1500_v7 }
 0x38f   :  { %v3538_v55 = vpop.f32.mrb[48].mxu1 }
 0x390   :  { %v3540_v48 = vpop.f32.mrb[49].mxu1  ;;  %v1502_v4 = vadd.f32 1e-05, %v1501_v43 }
 0x392   :  { %2583 = vrsqrt.f32 %v1502_v4 }
 0x393   :  { %v3542_v35 = vpop.f32.mrb[50].mxu1 }
 0x394   :  { %v3544_v29 = vpop.f32.mrb[51].mxu1 }
 0x397   :  { %v3546_v52 = vpop.f32.mrb[52].mxu1 }
 0x398   :  { %v3548_v57 = vpop.f32.mrb[53].mxu1 }
 0x39b   :  { %v3550_v16 = vpop.f32.mrb[54].mxu1 }
 0x39c   :  { %v3552_v14 = vpop.f32.mrb[55].mxu1  ;;  %v3560_v26 = vpop.eup %2583 }
 0x39d   :  { %v1505_v51 = vmul.f32 %v3560_v26, %v3323_v30  ;;  %v1504_v42 = vmul.f32 %v3560_v26, %v3320_v44  ;;  %v1507_v2 = vmul.f32 %v3560_v26, %v3333_v13  ;;  %v1506_v37 = vmul.f32 %v3560_v26, %v3326_v33 }
 0x39e   :  { %v1509_v19 = vmul.f32 %v3560_v26, %v3346_v61  ;;  %v1508_v15 = vmul.f32 %v3560_v26, %v3339_v12  ;;  %v1511_v36 = vmul.f32 %v3560_v26, %v3358_v60  ;;  %v1510_v30 = vmul.f32 %v3560_v26, %v3351_v49 }
 0x39f   :  { %v1525_v44 = vmul.f32 %v3558_v41, %v1505_v51  ;;  %v1524_v24 = vmul.f32 %v3558_v41, %v1504_v42  ;;  %v1527_v13 = vmul.f32 %v3558_v41, %v1507_v2  ;;  %v1526_v33 = vmul.f32 %v3558_v41, %v1506_v37 }
 0x3a0   :  { %v1529_v53 = vmul.f32 %v3558_v41, %v1509_v19  ;;  %v1528_v61 = vmul.f32 %v3558_v41, %v1508_v15  ;;  %v1531_v12 = vmul.f32 %v3558_v41, %v1511_v36  ;;  %v1530_v47 = vmul.f32 %v3558_v41, %v1510_v30 }
 0x3a1   :  { %v1545_v60 = vadd.f32 %v2793_v38, %v1525_v44  ;;  %v1544_v49 = vadd.f32 %v2793_v38, %v1524_v24  ;;  %v1547_v17 = vadd.f32 %v2793_v38, %v1527_v13  ;;  %v1546_v20 = vadd.f32 %v2793_v38, %v1526_v33 }
 0x3a2   :  { %v1549_v54 = vadd.f32 %v2793_v38, %v1529_v53  ;;  %v1548_v22 = vadd.f32 %v2793_v38, %v1528_v61  ;;  %v1551_v27 = vadd.f32 %v2793_v38, %v1531_v12  ;;  %v1550_v23 = vadd.f32 %v2793_v38, %v1530_v47 }
 0x3a3   :  { %vm1561_vm0 = vcmp.gt.f32.partialorder %v1545_v60, 0.0  ;;  %v1577_v28 = vmul.f32 0.2, %v1545_v60  ;;  %vm1560_vm5 = vcmp.gt.f32.partialorder %v1544_v49, 0.0  ;;  %v1576_v34 = vmul.f32 0.2, %v1544_v49 }
 0x3a4   :  { %vm1563_vm6 = vcmp.gt.f32.partialorder %v1547_v17, 0.0  ;;  %v1579_v25 = vmul.f32 0.2, %v1547_v17  ;;  %vm1562_vm7 = vcmp.gt.f32.partialorder %v1546_v20, 0.0  ;;  %v1578_v8 = vmul.f32 0.2, %v1546_v20 }
 0x3a5   :  { %v1593_v46 = vsel %vm1561_vm0, %v1545_v60, %v1577_v28  ;;  %v1592_v0 = vsel %vm1560_vm5, %v1544_v49, %v1576_v34  ;;  %vm1565_vm8 = vcmp.gt.f32.partialorder %v1549_v54, 0.0  ;;  %v1581_v50 = vmul.f32 0.2, %v1549_v54 }
 0x3a6   :  { %v1808_v39 = vmul.f32 %v3520_v31, %v1593_v46  ;;  %v1807_v62 = vmul.f32 %v3523_v21, %v1592_v0  ;;  %v1595_v7 = vsel %vm1563_vm6, %v1547_v17, %v1579_v25  ;;  %v1594_v43 = vsel %vm1562_vm7, %v1546_v20, %v1578_v8 }
 0x3a7   :  { %v1810_v4 = vmul.f32 %v3526_v3, %v1595_v7  ;;  %v1809_v58 = vmul.f32 %v3528_v10, %v1594_v43  ;;  %v1597_v51 = vsel %vm1565_vm8, %v1549_v54, %v1581_v50  ;;  %vm1564_vm9 = vcmp.gt.f32.partialorder %v1548_v22, 0.0 }
 0x3a8   :  { %v1812_v42 = vmul.f32 %v3530_v18, %v1597_v51  ;;  %v1580_v2 = vmul.f32 0.2, %v1548_v22  ;;  %vm1567_vm10 = vcmp.gt.f32.partialorder %v1551_v27, 0.0  ;;  %v1583_v37 = vmul.f32 0.2, %v1551_v27  ;;  %2500 = vmatprep.mubr.msk.f32.mxu0 %vm1007_vm2, %v1807_v62 }
 0x3a9   :  { %vm1566_vm11 = vcmp.gt.f32.partialorder %v1550_v23, 0.0  ;;  %v1582_v19 = vmul.f32 0.2, %v1550_v23  ;;  %v1513_v31 = vmul.f32 %v3560_v26, %v3370_v9  ;;  %v1512_v21 = vmul.f32 %v3560_v26, %v3363_v5  ;;  %2501 = vmatmul.mubr.msk.f32.vlgmr.msra.gmra.mrb[40].mxu0 %vm1007_vm2, %v1808_v39 }
 0x3aa   :  { %v1596_v3 = vsel %vm1564_vm9, %v1548_v22, %v1580_v2  ;;  %v1599_v10 = vsel %vm1567_vm10, %v1551_v27, %v1583_v37  ;;  %v1515_v18 = vmul.f32 %v3560_v26, %v3385_v40  ;;  %v1514_v15 = vmul.f32 %v3560_v26, %v3375_v6  ;;  %2503 = vmatprep.mubr.msk.f32.mxu0 %vm1007_vm2, %v1809_v58 }
 0x3ab   :  { %v1811_v36 = vmul.f32 %v3532_v1, %v1596_v3  ;;  %v1814_v30 = vmul.f32 %v3534_v45, %v1599_v10  ;;  %v1598_v9 = vsel %vm1566_vm11, %v1550_v23, %v1582_v19  ;;  %v1533_v44 = vmul.f32 %v3558_v41, %v1513_v31 }
 0x3ac   :  { %v1813_v5 = vmul.f32 %v3536_v59, %v1598_v9  ;;  %v1532_v24 = vmul.f32 %v3558_v41, %v1512_v21  ;;  %v1535_v13 = vmul.f32 %v3558_v41, %v1515_v18  ;;  %v1534_v40 = vmul.f32 %v3558_v41, %v1514_v15 }
 0x3ad   :  { %v1553_v33 = vadd.f32 %v2793_v38, %v1533_v44  ;;  %v1517_v6 = vmul.f32 %v3560_v26, %v3394_v11  ;;  %v1516_v1 = vmul.f32 %v3560_v26, %v3390_v32  ;;  %v1519_v45 = vmul.f32 %v3560_v26, %v3425_v56  ;;  %2504 = vmatmul.mubr.msk.f32.gmra.mrb[42].mxu0 %vm1007_vm2, %v1810_v4 }
 0x3ae   :  { %v1552_v59 = vadd.f32 %v2793_v38, %v1532_v24  ;;  %v1555_v53 = vadd.f32 %v2793_v38, %v1535_v13  ;;  %v1554_v61 = vadd.f32 %v2793_v38, %v1534_v40  ;;  %v1518_v12 = vmul.f32 %v3560_v26, %v3408_v63  ;;  %2506 = vmatprep.mubr.msk.f32.mxu0 %vm1007_vm2, %v1811_v36 }
 0x3af   :  { %vm1569_vm12 = vcmp.gt.f32.partialorder %v1553_v33, 0.0  ;;  %v1585_v11 = vmul.f32 0.2, %v1553_v33  ;;  %v1537_v32 = vmul.f32 %v3558_v41, %v1517_v6  ;;  %v1536_v47 = vmul.f32 %v3558_v41, %v1516_v1 }
 0x3b0   :  { %vm1568_vm13 = vcmp.gt.f32.partialorder %v1552_v59, 0.0  ;;  %v1584_v56 = vmul.f32 0.2, %v1552_v59  ;;  %vm1571_vm14 = vcmp.gt.f32.partialorder %v1555_v53, 0.0  ;;  %v1587_v60 = vmul.f32 0.2, %v1555_v53 }
 0x3b1   :  { %v1601_v49 = vsel %vm1569_vm12, %v1553_v33, %v1585_v11  ;;  %vm1570_vm15 = vcmp.gt.f32.partialorder %v1554_v61, 0.0  ;;  %v1586_v17 = vmul.f32 0.2, %v1554_v61  ;;  %v1557_v20 = vadd.f32 %v2793_v38, %v1537_v32  ;;  %2507 = vmatmul.mubr.msk.f32.gmra.mrb[44].mxu0 %vm1007_vm2, %v1812_v42 }
 0x3b2   :  { %v1816_v63 = vmul.f32 %v3538_v55, %v1601_v49  ;;  %v1600_v26 = vsel %vm1568_vm13, %v1552_v59, %v1584_v56  ;;  %v1603_v54 = vsel %vm1571_vm14, %v1555_v53, %v1587_v60  ;;  %v1556_v22 = vadd.f32 %v2793_v38, %v1536_v47  ;;  %2509 = vmatprep.mubr.msk.f32.mxu0 %vm1007_vm2, %v1813_v5 }
 0x3b3   :  { %v1815_v27 = vmul.f32 %v3540_v48, %v1600_v26  ;;  %v1818_v23 = vmul.f32 %v3542_v35, %v1603_v54  ;;  %v1602_v28 = vsel %vm1570_vm15, %v1554_v61, %v1586_v17  ;;  %vm1573_vm1 = vcmp.gt.f32.partialorder %v1557_v20, 0.0 }
 0x3b4   :  { %v1817_v34 = vmul.f32 %v3544_v29, %v1602_v28  ;;  %v1589_v25 = vmul.f32 0.2, %v1557_v20  ;;  %vm1572_vm3 = vcmp.gt.f32.partialorder %v1556_v22, 0.0  ;;  %v1588_v8 = vmul.f32 0.2, %v1556_v22 }
 0x3b5   :  { %v1539_v46 = vmul.f32 %v3558_v41, %v1519_v45  ;;  %v1538_v55 = vmul.f32 %v3558_v41, %v1518_v12  ;;  %2510 = vmatmul.mubr.msk.f32.gmra.mrb[46].mxu0 %vm1007_vm2, %v1814_v30 }
 0x3b6   :  { %v1605_v0 = vsel %vm1573_vm1, %v1557_v20, %v1589_v25  ;;  %v1604_v50 = vsel %vm1572_vm3, %v1556_v22, %v1588_v8  ;;  %2512 = vmatprep.mubr.msk.f32.mxu0 %vm1007_vm2, %v1815_v27 }
 0x3b7   :  { %v1820_v48 = vmul.f32 %v3546_v52, %v1605_v0  ;;  %v1819_v35 = vmul.f32 %v3548_v57, %v1604_v50  ;;  %v1559_v39 = vadd.f32 %v2793_v38, %v1539_v46  ;;  %v1558_v29 = vadd.f32 %v2793_v38, %v1538_v55 }
 0x3b9   :  { %vm1575_vm4 = vcmp.gt.f32.partialorder %v1559_v39, 0.0  ;;  %v1591_v62 = vmul.f32 0.2, %v1559_v39  ;;  %vm1574_vm0 = vcmp.gt.f32.partialorder %v1558_v29, 0.0  ;;  %v1590_v7 = vmul.f32 0.2, %v1558_v29  ;;  %2513 = vmatmul.mubr.msk.f32.gmra.mrb[48].mxu0 %vm1007_vm2, %v1816_v63 }
 0x3ba   :  { %2515 = vmatprep.mubr.msk.f32.mxu0 %vm1007_vm2, %v1817_v34 }
 0x3bb   :  { %v1607_v41 = vsel %vm1575_vm4, %v1559_v39, %v1591_v62  ;;  %v1606_v43 = vsel %vm1574_vm0, %v1558_v29, %v1590_v7 }
 0x3bc   :  { %v1822_v4 = vmul.f32 %v3550_v16, %v1607_v41  ;;  %v1821_v52 = vmul.f32 %v3552_v14, %v1606_v43 }
 0x3bd   :  { %2516 = vmatmul.mubr.msk.f32.gmra.mrb[50].mxu0 %vm1007_vm2, %v1818_v23 }
 0x3be   :  { %2518 = vmatprep.mubr.msk.f32.mxu0 %vm1007_vm2, %v1819_v35 }
 0x3c1   :  { %2519 = vmatmul.mubr.msk.f32.gmra.mrb[52].mxu0 %vm1007_vm2, %v1820_v48 }
 0x3c2   :  { %2521 = vmatprep.mubr.msk.f32.mxu0 %vm1007_vm2, %v1821_v52 }
 0x3c5   :  { %2522 = vmatmul.mubr.msk.f32.gmra.mrb[54].mxu0 %vm1007_vm2, %v1822_v4 }
 0x47c   :  { %v2502_v38 = vpop.f32.mrb[40].mxu0 }
 0x47d   :  { %2017 = vst [vmem:[#allocation2 + $0x8] sm:$0xff] %v2502_v38  ;;  %v1937_v57 = vpop.f32.mrb[41].mxu0 }
 0x47e   :  { %2016 = vst [vmem:[#allocation2] sm:$0xff] %v1937_v57 }
 0x480   :  { %v2505_v58 = vpop.f32.mrb[42].mxu0 }
 0x481   :  { %2019 = vst [vmem:[#allocation2 + $0x18] sm:$0xff] %v2505_v58  ;;  %v1947_v51 = vpop.f32.mrb[43].mxu0 }
 0x482   :  { %2018 = vst [vmem:[#allocation2 + $0x10] sm:$0xff] %v1947_v51 }
 0x484   :  { %v2508_v16 = vpop.f32.mrb[44].mxu0 }
 0x485   :  { %2021 = vst [vmem:[#allocation2 + $0x28] sm:$0xff] %v2508_v16  ;;  %v1957_v14 = vpop.f32.mrb[45].mxu0 }
 0x486   :  { %2020 = vst [vmem:[#allocation2 + $0x20] sm:$0xff] %v1957_v14 }
 0x488   :  { %v2511_v42 = vpop.f32.mrb[46].mxu0 }
 0x489   :  { %2023 = vst [vmem:[#allocation2 + $0x38] sm:$0xff] %v2511_v42  ;;  %v1967_v2 = vpop.f32.mrb[47].mxu0 }
 0x48a   :  { %2022 = vst [vmem:[#allocation2 + $0x30] sm:$0xff] %v1967_v2 }
 0x48c   :  { %v2514_v37 = vpop.f32.mrb[48].mxu0 }
 0x48d   :  { %2025 = vst [vmem:[#allocation2 + $0x48] sm:$0xff] %v2514_v37  ;;  %v1977_v19 = vpop.f32.mrb[49].mxu0 }
 0x48e   :  { %2024 = vst [vmem:[#allocation2 + $0x40] sm:$0xff] %v1977_v19 }
 0x490   :  { %v2517_v31 = vpop.f32.mrb[50].mxu0 }
 0x491   :  { %2027 = vst [vmem:[#allocation2 + $0x58] sm:$0xff] %v2517_v31  ;;  %v1987_v21 = vpop.f32.mrb[51].mxu0 }
 0x492   :  { %2026 = vst [vmem:[#allocation2 + $0x50] sm:$0xff] %v1987_v21 }
 0x494   :  { %v2520_v3 = vpop.f32.mrb[52].mxu0 }
 0x495   :  { %2029 = vst [vmem:[#allocation2 + $0x68] sm:$0xff] %v2520_v3  ;;  %v1997_v10 = vpop.f32.mrb[53].mxu0 }
 0x496   :  { %2028 = vst [vmem:[#allocation2 + $0x60] sm:$0xff] %v1997_v10 }
 0x498   :  { %v2523_v18 = vpop.f32.mrb[54].mxu0 }
 0x499   :  { %2031 = vst [vmem:[#allocation2 + $0x78] sm:$0xff] %v2523_v18  ;;  %v2007_v15 = vpop.f32.mrb[55].mxu0 }
 0x49a   :  { %2030 = vst [vmem:[#allocation2 + $0x70] sm:$0xff] %v2007_v15 }
 0x49b   :  { %2597 = shalt.err (!%p2594_p4)
}
 0x49c   :  { %s2598_s28 = scalar_lea.hbm %s3680_s10, 2048 }
 0x49d   :  { %p2599_p5 = scmp.ne.s32.totalorder %s3680_s10, %s2598_s28  ;;  %p2602_p6 = scmp.lt.u32.totalorder %s2598_s28, %s3680_s10 }
 0x49f   :  { %p2604_p7 = pnand %p2602_p6, %p2599_p5 }
 0x4a1   :  { %2607 = shalt.err (!%p2604_p7)
}
 0x4a2   :  { %s2611_s12 = smov 128   ;;  %s2612_s13 = smov 8  }
 0x4a3   :  { %2043 = dma.vmem_to_hbm [thread:$0]  %s2038_s1, 2048, %s3680_s10, [#allocation3], %s2611_s12, %s2611_s12, %s2612_s13  }
 0x4a4   :  { %2608 = dma.done.wait [#allocation3], 2048  }
 0x4a5   :  { %2609 = vsyncadd [#allocation3], 4294965248 }
 0x4a6   :  { %2047 = vsyncpa [#allocation3], 1 }

</bundles_post_ra>
